<compile_context>
chip_gen: v5e
topology: v5e:2x2
jax: 0.10.0
libtpu: 0.0.40
codegen_flags: <defaults>
</compile_context>

<pallas_src>
import math
import functools

import jax
import jax.numpy as jnp
from jax import lax
from jax.experimental import pallas as pl
from jax.experimental.pallas import tpu as pltpu


def _flash_attention_kernel(q_ref, kp_ref, vp_ref, wq_ref, bq_ref, wo_ref, bo_ref,
                            out_ref,
                            qp_scratch, m_scratch, l_scratch, acc_scratch,
                            *, n_heads, d_k, scale):
    """One (batch, q_tile, kv_tile) grid step.

    kv is the innermost ("arbitrary") axis: kv==0 computes the scaled Q projection and resets
    the online-softmax state; every kv step folds one projected K/V tile into the running
    (m, l, acc); the last kv step normalizes, applies fc_o and stores the output tile.
    """
    f32, bf16 = jnp.float32, jnp.bfloat16
    kv = pl.program_id(2)

    @pl.when(kv == 0)
    def _init():
        x_q = q_ref[0]                                                    # (tq, d_model) bf16
        qp = jnp.dot(x_q, wq_ref[...], preferred_element_type=f32) + bq_ref[...]
        qp_scratch[...] = (qp * scale).astype(bf16)                       # fold 1/sqrt(d_k) once
        m_scratch[...] = jnp.full_like(m_scratch, -jnp.inf)
        l_scratch[...] = jnp.zeros_like(l_scratch)
        acc_scratch[...] = jnp.zeros_like(acc_scratch)

    kp = kp_ref[0]                                                        # (tkv, d_model) bf16
    vp = vp_ref[0]                                                        # (tkv, d_model) bf16
    dn = (((1,), (1,)), ((), ()))      # contract last dims: q @ k^T without materializing k^T

    for h in range(n_heads):           # static unroll; heads are few and static
        sl = slice(h * d_k, (h + 1) * d_k)
        s = lax.dot_general(qp_scratch[:, sl], kp[:, sl], dn,
                            preferred_element_type=f32)                   # (tq, tkv) f32
        m_prev = m_scratch[:, h:h + 1]
        m_new = jnp.maximum(m_prev, jnp.max(s, axis=-1, keepdims=True))
        alpha = jnp.exp(m_prev - m_new)
        p = jnp.exp(s - m_new)                                            # unnormalized probs
        l_scratch[:, h:h + 1] = alpha * l_scratch[:, h:h + 1] + jnp.sum(p, axis=-1, keepdims=True)
        acc_scratch[:, sl] = alpha * acc_scratch[:, sl] + jnp.dot(
            p.astype(bf16), vp[:, sl], preferred_element_type=f32)
        m_scratch[:, h:h + 1] = m_new

    @pl.when(kv == pl.num_programs(2) - 1)
    def _finalize():
        # Deferred softmax normalization: one (tq, d_k) multiply per head instead of
        # normalizing the (tq, nk) probabilities. Reuse qp_scratch as the bf16 context slab.
        inv_l = pl.reciprocal(l_scratch[...], approx=True)                # (tq, n_heads)
        for h in range(n_heads):
            sl = slice(h * d_k, (h + 1) * d_k)
            qp_scratch[:, sl] = (acc_scratch[:, sl] * inv_l[:, h:h + 1]).astype(bf16)
        out = jnp.dot(qp_scratch[...], wo_ref[...], preferred_element_type=f32) + bo_ref[...]
        out_ref[0] = out.astype(out_ref.dtype)


def _pick_tile(n, target):
    """Largest divisor of n that is a multiple of 8 and <= target (n itself if n <= target)."""
    if n <= target:
        return n
    for t in range(target, 7, -1):
        if n % t == 0 and t % 8 == 0:
            return t
    # TODO(synk): pad ragged sequence lengths; a full-length tile can blow VMEM for very long n.
    return n


def prepare_attention_params(params, d_model):
    """One-time parameter prep: bf16 weight cast + (1, d_model) f32 biases (not per call)."""
    bf16, f32 = jnp.bfloat16, jnp.float32
    return {
        "Wq": params["Wq"].astype(bf16), "bq": params["bq"].reshape(1, d_model).astype(f32),
        "Wk": params["Wk"].astype(bf16), "bk": params["bk"].reshape(1, d_model).astype(f32),
        "Wv": params["Wv"].astype(bf16), "bv": params["bv"].reshape(1, d_model).astype(f32),
        "Wo": params["Wo"].astype(bf16), "bo": params["bo"].reshape(1, d_model).astype(f32),
    }


def attention_pallas(q, k, v, prepared, n_heads, *, q_tile=256, kv_tile=512,
                     out_dtype=jnp.float32):
    """q, k, v: (B, N, d_model) float32. prepared: output of prepare_attention_params.

    out_dtype defaults to f32 to match the PyTorch module; pass bf16 to halve HBM writeback
    if the consumer tolerates it.
    """
    B, nq, d_model = q.shape
    nk = k.shape[1]
    d_k = d_model // n_heads
    bf16, f32 = jnp.bfloat16, jnp.float32

    # K / V projections once per call (plain XLA bf16 matmuls, f32 accumulation) instead of
    # re-projecting the full K/V inside the kernel for every q-tile.
    kp = (jnp.dot(k.astype(bf16), prepared["Wk"], preferred_element_type=f32)
          + prepared["bk"]).astype(bf16)
    vp = (jnp.dot(v.astype(bf16), prepared["Wv"], preferred_element_type=f32)
          + prepared["bv"]).astype(bf16)
    qb = q.astype(bf16)

    tq = _pick_tile(nq, q_tile)      # multiples of 256 by default (keeps 256-wide MXU full)
    tkv = _pick_tile(nk, kv_tile)
    grid = (B, nq // tq, nk // tkv)

    # Generation-aware scoped-VMEM limit (v5e/v6e: 128 MiB, v7x: 64 MiB per TC).
    try:
        vmem_cap = int(pltpu.get_tpu_info().vmem_capacity_bytes)
    except Exception:
        vmem_cap = 0
    if vmem_cap <= 0:
        vmem_cap = 64 * 1024 * 1024
    vmem_limit = vmem_cap * 3 // 4

    kernel = functools.partial(_flash_attention_kernel,
                               n_heads=n_heads, d_k=d_k, scale=1.0 / math.sqrt(d_k))

    def build(weight_pipeline_mode):
        wkw = {} if weight_pipeline_mode is None else {"pipeline_mode": weight_pipeline_mode}
        in_specs = [
            pl.BlockSpec((1, tq, d_model), lambda b, i, j: (b, i, 0)),          # q tile
            pl.BlockSpec((1, tkv, d_model), lambda b, i, j: (b, j, 0)),         # projected K tile
            pl.BlockSpec((1, tkv, d_model), lambda b, i, j: (b, j, 0)),         # projected V tile
            pl.BlockSpec((d_model, d_model), lambda b, i, j: (0, 0), **wkw),    # Wq (grid-invariant)
            pl.BlockSpec((1, d_model), lambda b, i, j: (0, 0), **wkw),          # bq
            pl.BlockSpec((d_model, d_model), lambda b, i, j: (0, 0), **wkw),    # Wo
            pl.BlockSpec((1, d_model), lambda b, i, j: (0, 0), **wkw),          # bo
        ]
        out_specs = pl.BlockSpec((1, tq, d_model), lambda b, i, j: (b, i, 0))
        return pl.pallas_call(
            kernel,
            out_shape=jax.ShapeDtypeStruct((B, nq, d_model), out_dtype),
            grid_spec=pltpu.PrefetchScalarGridSpec(
                num_scalar_prefetch=0,
                grid=grid,
                in_specs=in_specs,
                out_specs=out_specs,
                scratch_shapes=[
                    pltpu.VMEM((tq, d_model), bf16),     # scaled Q proj -> reused as ctx slab
                    pltpu.VMEM((tq, n_heads), f32),      # running row max per head
                    pltpu.VMEM((tq, n_heads), f32),      # running softmax denominator per head
                    pltpu.VMEM((tq, d_model), f32),      # running unnormalized context
                ]),
            compiler_params=pltpu.CompilerParams(
                # batch & q-tile axes are independent (shard across TensorCores on v7x);
                # kv is the online-softmax reduction axis.
                dimension_semantics=("parallel", "parallel", "arbitrary"),
                vmem_limit_bytes=vmem_limit,
            ),
        )

    args = (qb, kp, vp, prepared["Wq"], prepared["bq"], prepared["Wo"], prepared["bo"])
    try:
        # Grid-invariant weights/biases single-buffered to halve their VMEM footprint
        # (they are only DMA'd once; K/V tiles keep default double-buffering for overlap).
        return jax.block_until_ready(build(pl.Buffered(1))(*args))
    except Exception:
        # TODO(synk): pipeline_mode=pl.Buffered(1) unsupported on this jax version; fall back
        #             to default double-buffering (costs VMEM headroom only, same results).
        return build(None)(*args)


def attention_reference(q, k, v, params, n_heads):
    """Pure-JAX f32 reference mirroring the PyTorch forward (eval, no mask, n_memories=0)."""
    B, nq, d_model = q.shape
    H = n_heads
    d_k = d_model // H
    qp = q @ params["Wq"] + params["bq"]
    kp = k @ params["Wk"] + params["bk"]
    vp = v @ params["Wv"] + params["bv"]
    qh = qp.reshape(B, nq, H, d_k).transpose(0, 2, 1, 3)
    kh = kp.reshape(B, -1, H, d_k).transpose(0, 2, 1, 3)
    vh = vp.reshape(B, -1, H, d_k).transpose(0, 2, 1, 3)
    scores = jnp.einsum("bhqd,bhkd->bhqk", qh, kh) / math.sqrt(d_k)
    p = jax.nn.softmax(scores, axis=-1)
    ctx = jnp.einsum("bhqk,bhkd->bhqd", p, vh)
    out = ctx.transpose(0, 2, 1, 3).reshape(B, nq, d_model)
    return out @ params["Wo"] + params["bo"]


def xavier_uniform(key, fan_in, fan_out):
    bound = math.sqrt(6.0 / (fan_in + fan_out))
    return jax.random.uniform(key, (fan_in, fan_out), jnp.float32, -bound, bound)


if __name__ == "__main__":
    B, N, d_model, n_heads = 2, 8, 32, 4

    root = jax.random.PRNGKey(0)
    k_q, k_k, k_v, k_wq, k_wk, k_wv, k_wo = jax.random.split(root, 7)

    q = jax.random.normal(k_q, (B, N, d_model), jnp.float32)
    k = jax.random.normal(k_k, (B, N, d_model), jnp.float32)
    v = jax.random.normal(k_v, (B, N, d_model), jnp.float32)

    # Deterministic init matching init_params: xavier_uniform weights, zero biases.
    # Weights stored in (in, out) layout so y = x @ W + b.
    params = {
        "Wq": xavier_uniform(k_wq, d_model, d_model), "bq": jnp.zeros((d_model,), jnp.float32),
        "Wk": xavier_uniform(k_wk, d_model, d_model), "bk": jnp.zeros((d_model,), jnp.float32),
        "Wv": xavier_uniform(k_wv, d_model, d_model), "bv": jnp.zeros((d_model,), jnp.float32),
        "Wo": xavier_uniform(k_wo, d_model, d_model), "bo": jnp.zeros((d_model,), jnp.float32),
    }
    prepared = prepare_attention_params(params, d_model)   # bf16 weight cast happens once

    out = attention_pallas(q, k, v, prepared, n_heads)
    out = jax.block_until_ready(out)

    ref = attention_reference(q, k, v, params, n_heads)
    assert out.shape == (B, N, d_model)
    # bf16 activations/weights with f32 accumulation -> loosened tolerance vs f32 reference.
    err = float(jnp.max(jnp.abs(out - ref)))
    assert jnp.allclose(out, ref, atol=5e-2, rtol=5e-2), err

    print("KERNEL_OK")
</pallas_src>

<mosaic_0001>
module attributes {stable_mosaic.version = 11 : i64} {
  func.func @_flash_attention_kernel(%arg0: i32, %arg1: i32, %arg2: i32, %arg3: memref<1x8x32xbf16, #tpu.memory_space<vmem>>, %arg4: memref<1x8x32xbf16, #tpu.memory_space<vmem>>, %arg5: memref<1x8x32xbf16, #tpu.memory_space<vmem>>, %arg6: memref<32x32xbf16, #tpu.memory_space<vmem>>, %arg7: memref<1x32xf32, #tpu.memory_space<vmem>>, %arg8: memref<32x32xbf16, #tpu.memory_space<vmem>>, %arg9: memref<1x32xf32, #tpu.memory_space<vmem>>, %arg10: memref<1x8x32xf32, #tpu.memory_space<vmem>>, %arg11: memref<8x32xbf16, #tpu.memory_space<vmem>>, %arg12: memref<8x4xf32, #tpu.memory_space<vmem>>, %arg13: memref<8x4xf32, #tpu.memory_space<vmem>>, %arg14: memref<8x32xf32, #tpu.memory_space<vmem>>) attributes {dimension_semantics = [#tpu.dimension_semantics<parallel>, #tpu.dimension_semantics<parallel>, #tpu.dimension_semantics<arbitrary>], iteration_bounds = array<i64: 2, 1, 1>, scalar_prefetch = 0 : i64, scratch_operands = 4 : i64, tpu.core_type = #tpu.core_type<tc>, window_params = [{transform_indices = @transform_0, window_bounds = array<i64: 1, 8, 32>}, {transform_indices = @transform_1, window_bounds = array<i64: 1, 8, 32>}, {transform_indices = @transform_2, window_bounds = array<i64: 1, 8, 32>}, {pipeline_mode = #tpu.pipeline_mode<synchronous>, transform_indices = @transform_3, window_bounds = array<i64: 32, 32>}, {pipeline_mode = #tpu.pipeline_mode<synchronous>, transform_indices = @transform_4, window_bounds = array<i64: 1, 32>}, {pipeline_mode = #tpu.pipeline_mode<synchronous>, transform_indices = @transform_5, window_bounds = array<i64: 32, 32>}, {pipeline_mode = #tpu.pipeline_mode<synchronous>, transform_indices = @transform_6, window_bounds = array<i64: 1, 32>}, {transform_indices = @transform_7, window_bounds = array<i64: 1, 8, 32>}]} {
    %c0_i32 = arith.constant 0 : i32
    %0 = arith.cmpi eq, %arg2, %c0_i32 : i32
    %1 = arith.extui %0 : i1 to i32
    %c0_i32_0 = arith.constant 0 : i32
    %2 = arith.cmpi ne, %1, %c0_i32_0 : i32
    scf.if %2 {
      %c0_73 = arith.constant 0 : index
      %c0_74 = arith.constant 0 : index
      %c0_75 = arith.constant 0 : index
      %118 = vector.load %arg3[%c0_73, %c0_74, %c0_75] : memref<1x8x32xbf16, #tpu.memory_space<vmem>>, vector<1x8x32xbf16>
      %119 = vector.shape_cast %118 : vector<1x8x32xbf16> to vector<8x32xbf16>
      %c0_76 = arith.constant 0 : index
      %c0_77 = arith.constant 0 : index
      %120 = vector.load %arg6[%c0_76, %c0_77] : memref<32x32xbf16, #tpu.memory_space<vmem>>, vector<32x32xbf16>
      %cst_78 = arith.constant dense<0.000000e+00> : vector<8x32xf32>
      %121 = tpu.matmul %119, %120, %cst_78 {dimension_numbers = #tpu.dot_dimension_numbers<[1], [0], [0], [1], [0, 0, 1, 1], [], []>} : vector<8x32xbf16>, vector<32x32xbf16>, vector<8x32xf32> -> vector<8x32xf32>
      %c0_79 = arith.constant 0 : index
      %c0_80 = arith.constant 0 : index
      %122 = vector.load %arg7[%c0_79, %c0_80] : memref<1x32xf32, #tpu.memory_space<vmem>>, vector<1x32xf32>
      %123 = vector.broadcast %122 : vector<1x32xf32> to vector<8x32xf32>
      %124 = arith.addf %121, %123 : vector<8x32xf32>
      %cst_81 = arith.constant 0.353553385 : f32
      %125 = vector.broadcast %cst_81 : f32 to vector<8x32xf32>
      %126 = arith.mulf %124, %125 : vector<8x32xf32>
      %127 = arith.truncf %126 : vector<8x32xf32> to vector<8x32xbf16>
      %c0_82 = arith.constant 0 : index
      %c0_83 = arith.constant 0 : index
      %128 = vector.load %arg11[%c0_82, %c0_83] : memref<8x32xbf16, #tpu.memory_space<vmem>>, vector<8x32xbf16>
      tpu.vector_store %arg11[%c0_82, %c0_83], %127 {strides = array<i32>} : memref<8x32xbf16, #tpu.memory_space<vmem>>, vector<8x32xbf16>,
      %cst_84 = arith.constant 0xFF800000 : f32
      %129 = vector.broadcast %cst_84 : f32 to vector<8x4xf32>
      %c0_85 = arith.constant 0 : index
      %c0_86 = arith.constant 0 : index
      %130 = vector.load %arg12[%c0_85, %c0_86] : memref<8x4xf32, #tpu.memory_space<vmem>>, vector<8x4xf32>
      tpu.vector_store %arg12[%c0_85, %c0_86], %129 {strides = array<i32>} : memref<8x4xf32, #tpu.memory_space<vmem>>, vector<8x4xf32>,
      %cst_87 = arith.constant 0.000000e+00 : f32
      %131 = vector.broadcast %cst_87 : f32 to vector<8x4xf32>
      %c0_88 = arith.constant 0 : index
      %c0_89 = arith.constant 0 : index
      %132 = vector.load %arg13[%c0_88, %c0_89] : memref<8x4xf32, #tpu.memory_space<vmem>>, vector<8x4xf32>
      tpu.vector_store %arg13[%c0_88, %c0_89], %131 {strides = array<i32>} : memref<8x4xf32, #tpu.memory_space<vmem>>, vector<8x4xf32>,
      %cst_90 = arith.constant 0.000000e+00 : f32
      %133 = vector.broadcast %cst_90 : f32 to vector<8x32xf32>
      %c0_91 = arith.constant 0 : index
      %c0_92 = arith.constant 0 : index
      %134 = vector.load %arg14[%c0_91, %c0_92] : memref<8x32xf32, #tpu.memory_space<vmem>>, vector<8x32xf32>
      tpu.vector_store %arg14[%c0_91, %c0_92], %133 {strides = array<i32>} : memref<8x32xf32, #tpu.memory_space<vmem>>, vector<8x32xf32>,
    } else {
    }
    %c0 = arith.constant 0 : index
    %c0_1 = arith.constant 0 : index
    %c0_2 = arith.constant 0 : index
    %3 = vector.load %arg4[%c0, %c0_1, %c0_2] : memref<1x8x32xbf16, #tpu.memory_space<vmem>>, vector<1x8x32xbf16>
    %4 = vector.shape_cast %3 : vector<1x8x32xbf16> to vector<8x32xbf16>
    %c0_3 = arith.constant 0 : index
    %c0_4 = arith.constant 0 : index
    %c0_5 = arith.constant 0 : index
    %5 = vector.load %arg5[%c0_3, %c0_4, %c0_5] : memref<1x8x32xbf16, #tpu.memory_space<vmem>>, vector<1x8x32xbf16>
    %6 = vector.shape_cast %5 : vector<1x8x32xbf16> to vector<8x32xbf16>
    %c0_6 = arith.constant 0 : index
    %c0_7 = arith.constant 0 : index
    %7 = vector.load %arg11[%c0_6, %c0_7] : memref<8x32xbf16, #tpu.memory_space<vmem>>, vector<8x8xbf16>
    %8 = vector.extract_strided_slice %4 {offsets = [0, 0], sizes = [8, 8], strides = [1, 1]} : vector<8x32xbf16> to vector<8x8xbf16>
    %cst = arith.constant dense<0.000000e+00> : vector<8x8xf32>
    %9 = tpu.matmul %7, %8, %cst {dimension_numbers = #tpu.dot_dimension_numbers<[1], [1], [0], [0], [0, 0, 1, 0], [], []>} : vector<8x8xbf16>, vector<8x8xbf16>, vector<8x8xf32> -> vector<8x8xf32>
    %c0_8 = arith.constant 0 : index
    %c0_9 = arith.constant 0 : index
    %10 = vector.load %arg12[%c0_8, %c0_9] : memref<8x4xf32, #tpu.memory_space<vmem>>, vector<8x1xf32>
    %cst_10 = arith.constant dense<0xFF800000> : vector<8xf32>
    %11 = vector.multi_reduction <maximumf>, %9, %cst_10 [1] : vector<8x8xf32> to vector<8xf32>
    %12 = vector.shape_cast %11 : vector<8xf32> to vector<8x1xf32>
    %13 = arith.maximumf %10, %12 : vector<8x1xf32>
    %14 = arith.subf %10, %13 : vector<8x1xf32>
    %15 = math.exp %14 : vector<8x1xf32>
    %16 = vector.broadcast %13 : vector<8x1xf32> to vector<8x8xf32>
    %17 = arith.subf %9, %16 : vector<8x8xf32>
    %18 = math.exp %17 : vector<8x8xf32>
    %c0_11 = arith.constant 0 : index
    %c0_12 = arith.constant 0 : index
    %19 = vector.load %arg13[%c0_11, %c0_12] : memref<8x4xf32, #tpu.memory_space<vmem>>, vector<8x1xf32>
    %20 = arith.mulf %15, %19 : vector<8x1xf32>
    %cst_13 = arith.constant dense<0.000000e+00> : vector<8xf32>
    %21 = vector.multi_reduction <add>, %18, %cst_13 [1] : vector<8x8xf32> to vector<8xf32>
    %22 = vector.shape_cast %21 : vector<8xf32> to vector<8x1xf32>
    %23 = arith.addf %20, %22 : vector<8x1xf32>
    %c0_14 = arith.constant 0 : index
    %c0_15 = arith.constant 0 : index
    %24 = vector.load %arg13[%c0_14, %c0_15] : memref<8x4xf32, #tpu.memory_space<vmem>>, vector<8x1xf32>
    tpu.vector_store %arg13[%c0_14, %c0_15], %23 {strides = array<i32>} : memref<8x4xf32, #tpu.memory_space<vmem>>, vector<8x1xf32>,
    %c0_16 = arith.constant 0 : index
    %c0_17 = arith.constant 0 : index
    %25 = vector.load %arg14[%c0_16, %c0_17] : memref<8x32xf32, #tpu.memory_space<vmem>>, vector<8x8xf32>
    %26 = vector.broadcast %15 : vector<8x1xf32> to vector<8x8xf32>
    %27 = arith.mulf %26, %25 : vector<8x8xf32>
    %28 = arith.truncf %18 : vector<8x8xf32> to vector<8x8xbf16>
    %29 = vector.extract_strided_slice %6 {offsets = [0, 0], sizes = [8, 8], strides = [1, 1]} : vector<8x32xbf16> to vector<8x8xbf16>
    %cst_18 = arith.constant dense<0.000000e+00> : vector<8x8xf32>
    %30 = tpu.matmul %28, %29, %cst_18 {dimension_numbers = #tpu.dot_dimension_numbers<[1], [0], [0], [1], [0, 0, 1, 1], [], []>} : vector<8x8xbf16>, vector<8x8xbf16>, vector<8x8xf32> -> vector<8x8xf32>
    %31 = arith.addf %27, %30 : vector<8x8xf32>
    %c0_19 = arith.constant 0 : index
    %c0_20 = arith.constant 0 : index
    %32 = vector.load %arg14[%c0_19, %c0_20] : memref<8x32xf32, #tpu.memory_space<vmem>>, vector<8x8xf32>
    tpu.vector_store %arg14[%c0_19, %c0_20], %31 {strides = array<i32>} : memref<8x32xf32, #tpu.memory_space<vmem>>, vector<8x8xf32>,
    %c0_21 = arith.constant 0 : index
    %c0_22 = arith.constant 0 : index
    %33 = vector.load %arg12[%c0_21, %c0_22] : memref<8x4xf32, #tpu.memory_space<vmem>>, vector<8x1xf32>
    tpu.vector_store %arg12[%c0_21, %c0_22], %13 {strides = array<i32>} : memref<8x4xf32, #tpu.memory_space<vmem>>, vector<8x1xf32>,
    %c0_23 = arith.constant 0 : index
    %c8 = arith.constant 8 : index
    %34 = vector.load %arg11[%c0_23, %c8] : memref<8x32xbf16, #tpu.memory_space<vmem>>, vector<8x8xbf16>
    %35 = vector.extract_strided_slice %4 {offsets = [0, 8], sizes = [8, 8], strides = [1, 1]} : vector<8x32xbf16> to vector<8x8xbf16>
    %cst_24 = arith.constant dense<0.000000e+00> : vector<8x8xf32>
    %36 = tpu.matmul %34, %35, %cst_24 {dimension_numbers = #tpu.dot_dimension_numbers<[1], [1], [0], [0], [0, 0, 1, 0], [], []>} : vector<8x8xbf16>, vector<8x8xbf16>, vector<8x8xf32> -> vector<8x8xf32>
    %c0_25 = arith.constant 0 : index
    %c1 = arith.constant 1 : index
    %37 = vector.load %arg12[%c0_25, %c1] : memref<8x4xf32, #tpu.memory_space<vmem>>, vector<8x1xf32>
    %cst_26 = arith.constant dense<0xFF800000> : vector<8xf32>
    %38 = vector.multi_reduction <maximumf>, %36, %cst_26 [1] : vector<8x8xf32> to vector<8xf32>
    %39 = vector.shape_cast %38 : vector<8xf32> to vector<8x1xf32>
    %40 = arith.maximumf %37, %39 : vector<8x1xf32>
    %41 = arith.subf %37, %40 : vector<8x1xf32>
    %42 = math.exp %41 : vector<8x1xf32>
    %43 = vector.broadcast %40 : vector<8x1xf32> to vector<8x8xf32>
    %44 = arith.subf %36, %43 : vector<8x8xf32>
    %45 = math.exp %44 : vector<8x8xf32>
    %c0_27 = arith.constant 0 : index
    %c1_28 = arith.constant 1 : index
    %46 = vector.load %arg13[%c0_27, %c1_28] : memref<8x4xf32, #tpu.memory_space<vmem>>, vector<8x1xf32>
    %47 = arith.mulf %42, %46 : vector<8x1xf32>
    %cst_29 = arith.constant dense<0.000000e+00> : vector<8xf32>
    %48 = vector.multi_reduction <add>, %45, %cst_29 [1] : vector<8x8xf32> to vector<8xf32>
    %49 = vector.shape_cast %48 : vector<8xf32> to vector<8x1xf32>
    %50 = arith.addf %47, %49 : vector<8x1xf32>
    %c0_30 = arith.constant 0 : index
    %c1_31 = arith.constant 1 : index
    %51 = vector.load %arg13[%c0_30, %c1_31] : memref<8x4xf32, #tpu.memory_space<vmem>>, vector<8x1xf32>
    tpu.vector_store %arg13[%c0_30, %c1_31], %50 {strides = array<i32>} : memref<8x4xf32, #tpu.memory_space<vmem>>, vector<8x1xf32>,
    %c0_32 = arith.constant 0 : index
    %c8_33 = arith.constant 8 : index
    %52 = vector.load %arg14[%c0_32, %c8_33] : memref<8x32xf32, #tpu.memory_space<vmem>>, vector<8x8xf32>
    %53 = vector.broadcast %42 : vector<8x1xf32> to vector<8x8xf32>
    %54 = arith.mulf %53, %52 : vector<8x8xf32>
    %55 = arith.truncf %45 : vector<8x8xf32> to vector<8x8xbf16>
    %56 = vector.extract_strided_slice %6 {offsets = [0, 8], sizes = [8, 8], strides = [1, 1]} : vector<8x32xbf16> to vector<8x8xbf16>
    %cst_34 = arith.constant dense<0.000000e+00> : vector<8x8xf32>
    %57 = tpu.matmul %55, %56, %cst_34 {dimension_numbers = #tpu.dot_dimension_numbers<[1], [0], [0], [1], [0, 0, 1, 1], [], []>} : vector<8x8xbf16>, vector<8x8xbf16>, vector<8x8xf32> -> vector<8x8xf32>
    %58 = arith.addf %54, %57 : vector<8x8xf32>
    %c0_35 = arith.constant 0 : index
    %c8_36 = arith.constant 8 : index
    %59 = vector.load %arg14[%c0_35, %c8_36] : memref<8x32xf32, #tpu.memory_space<vmem>>, vector<8x8xf32>
    tpu.vector_store %arg14[%c0_35, %c8_36], %58 {strides = array<i32>} : memref<8x32xf32, #tpu.memory_space<vmem>>, vector<8x8xf32>,
    %c0_37 = arith.constant 0 : index
    %c1_38 = arith.constant 1 : index
    %60 = vector.load %arg12[%c0_37, %c1_38] : memref<8x4xf32, #tpu.memory_space<vmem>>, vector<8x1xf32>
    tpu.vector_store %arg12[%c0_37, %c1_38], %40 {strides = array<i32>} : memref<8x4xf32, #tpu.memory_space<vmem>>, vector<8x1xf32>,
    %c0_39 = arith.constant 0 : index
    %c16 = arith.constant 16 : index
    %61 = vector.load %arg11[%c0_39, %c16] : memref<8x32xbf16, #tpu.memory_space<vmem>>, vector<8x8xbf16>
    %62 = vector.extract_strided_slice %4 {offsets = [0, 16], sizes = [8, 8], strides = [1, 1]} : vector<8x32xbf16> to vector<8x8xbf16>
    %cst_40 = arith.constant dense<0.000000e+00> : vector<8x8xf32>
    %63 = tpu.matmul %61, %62, %cst_40 {dimension_numbers = #tpu.dot_dimension_numbers<[1], [1], [0], [0], [0, 0, 1, 0], [], []>} : vector<8x8xbf16>, vector<8x8xbf16>, vector<8x8xf32> -> vector<8x8xf32>
    %c0_41 = arith.constant 0 : index
    %c2 = arith.constant 2 : index
    %64 = vector.load %arg12[%c0_41, %c2] : memref<8x4xf32, #tpu.memory_space<vmem>>, vector<8x1xf32>
    %cst_42 = arith.constant dense<0xFF800000> : vector<8xf32>
    %65 = vector.multi_reduction <maximumf>, %63, %cst_42 [1] : vector<8x8xf32> to vector<8xf32>
    %66 = vector.shape_cast %65 : vector<8xf32> to vector<8x1xf32>
    %67 = arith.maximumf %64, %66 : vector<8x1xf32>
    %68 = arith.subf %64, %67 : vector<8x1xf32>
    %69 = math.exp %68 : vector<8x1xf32>
    %70 = vector.broadcast %67 : vector<8x1xf32> to vector<8x8xf32>
    %71 = arith.subf %63, %70 : vector<8x8xf32>
    %72 = math.exp %71 : vector<8x8xf32>
    %c0_43 = arith.constant 0 : index
    %c2_44 = arith.constant 2 : index
    %73 = vector.load %arg13[%c0_43, %c2_44] : memref<8x4xf32, #tpu.memory_space<vmem>>, vector<8x1xf32>
    %74 = arith.mulf %69, %73 : vector<8x1xf32>
    %cst_45 = arith.constant dense<0.000000e+00> : vector<8xf32>
    %75 = vector.multi_reduction <add>, %72, %cst_45 [1] : vector<8x8xf32> to vector<8xf32>
    %76 = vector.shape_cast %75 : vector<8xf32> to vector<8x1xf32>
    %77 = arith.addf %74, %76 : vector<8x1xf32>
    %c0_46 = arith.constant 0 : index
    %c2_47 = arith.constant 2 : index
    %78 = vector.load %arg13[%c0_46, %c2_47] : memref<8x4xf32, #tpu.memory_space<vmem>>, vector<8x1xf32>
    tpu.vector_store %arg13[%c0_46, %c2_47], %77 {strides = array<i32>} : memref<8x4xf32, #tpu.memory_space<vmem>>, vector<8x1xf32>,
    %c0_48 = arith.constant 0 : index
    %c16_49 = arith.constant 16 : index
    %79 = vector.load %arg14[%c0_48, %c16_49] : memref<8x32xf32, #tpu.memory_space<vmem>>, vector<8x8xf32>
    %80 = vector.broadcast %69 : vector<8x1xf32> to vector<8x8xf32>
    %81 = arith.mulf %80, %79 : vector<8x8xf32>
    %82 = arith.truncf %72 : vector<8x8xf32> to vector<8x8xbf16>
    %83 = vector.extract_strided_slice %6 {offsets = [0, 16], sizes = [8, 8], strides = [1, 1]} : vector<8x32xbf16> to vector<8x8xbf16>
    %cst_50 = arith.constant dense<0.000000e+00> : vector<8x8xf32>
    %84 = tpu.matmul %82, %83, %cst_50 {dimension_numbers = #tpu.dot_dimension_numbers<[1], [0], [0], [1], [0, 0, 1, 1], [], []>} : vector<8x8xbf16>, vector<8x8xbf16>, vector<8x8xf32> -> vector<8x8xf32>
    %85 = arith.addf %81, %84 : vector<8x8xf32>
    %c0_51 = arith.constant 0 : index
    %c16_52 = arith.constant 16 : index
    %86 = vector.load %arg14[%c0_51, %c16_52] : memref<8x32xf32, #tpu.memory_space<vmem>>, vector<8x8xf32>
    tpu.vector_store %arg14[%c0_51, %c16_52], %85 {strides = array<i32>} : memref<8x32xf32, #tpu.memory_space<vmem>>, vector<8x8xf32>,
    %c0_53 = arith.constant 0 : index
    %c2_54 = arith.constant 2 : index
    %87 = vector.load %arg12[%c0_53, %c2_54] : memref<8x4xf32, #tpu.memory_space<vmem>>, vector<8x1xf32>
    tpu.vector_store %arg12[%c0_53, %c2_54], %67 {strides = array<i32>} : memref<8x4xf32, #tpu.memory_space<vmem>>, vector<8x1xf32>,
    %c0_55 = arith.constant 0 : index
    %c24 = arith.constant 24 : index
    %88 = vector.load %arg11[%c0_55, %c24] : memref<8x32xbf16, #tpu.memory_space<vmem>>, vector<8x8xbf16>
    %89 = vector.extract_strided_slice %4 {offsets = [0, 24], sizes = [8, 8], strides = [1, 1]} : vector<8x32xbf16> to vector<8x8xbf16>
    %cst_56 = arith.constant dense<0.000000e+00> : vector<8x8xf32>
    %90 = tpu.matmul %88, %89, %cst_56 {dimension_numbers = #tpu.dot_dimension_numbers<[1], [1], [0], [0], [0, 0, 1, 0], [], []>} : vector<8x8xbf16>, vector<8x8xbf16>, vector<8x8xf32> -> vector<8x8xf32>
    %c0_57 = arith.constant 0 : index
    %c3 = arith.constant 3 : index
    %91 = vector.load %arg12[%c0_57, %c3] : memref<8x4xf32, #tpu.memory_space<vmem>>, vector<8x1xf32>
    %cst_58 = arith.constant dense<0xFF800000> : vector<8xf32>
    %92 = vector.multi_reduction <maximumf>, %90, %cst_58 [1] : vector<8x8xf32> to vector<8xf32>
    %93 = vector.shape_cast %92 : vector<8xf32> to vector<8x1xf32>
    %94 = arith.maximumf %91, %93 : vector<8x1xf32>
    %95 = arith.subf %91, %94 : vector<8x1xf32>
    %96 = math.exp %95 : vector<8x1xf32>
    %97 = vector.broadcast %94 : vector<8x1xf32> to vector<8x8xf32>
    %98 = arith.subf %90, %97 : vector<8x8xf32>
    %99 = math.exp %98 : vector<8x8xf32>
    %c0_59 = arith.constant 0 : index
    %c3_60 = arith.constant 3 : index
    %100 = vector.load %arg13[%c0_59, %c3_60] : memref<8x4xf32, #tpu.memory_space<vmem>>, vector<8x1xf32>
    %101 = arith.mulf %96, %100 : vector<8x1xf32>
    %cst_61 = arith.constant dense<0.000000e+00> : vector<8xf32>
    %102 = vector.multi_reduction <add>, %99, %cst_61 [1] : vector<8x8xf32> to vector<8xf32>
    %103 = vector.shape_cast %102 : vector<8xf32> to vector<8x1xf32>
    %104 = arith.addf %101, %103 : vector<8x1xf32>
    %c0_62 = arith.constant 0 : index
    %c3_63 = arith.constant 3 : index
    %105 = vector.load %arg13[%c0_62, %c3_63] : memref<8x4xf32, #tpu.memory_space<vmem>>, vector<8x1xf32>
    tpu.vector_store %arg13[%c0_62, %c3_63], %104 {strides = array<i32>} : memref<8x4xf32, #tpu.memory_space<vmem>>, vector<8x1xf32>,
    %c0_64 = arith.constant 0 : index
    %c24_65 = arith.constant 24 : index
    %106 = vector.load %arg14[%c0_64, %c24_65] : memref<8x32xf32, #tpu.memory_space<vmem>>, vector<8x8xf32>
    %107 = vector.broadcast %96 : vector<8x1xf32> to vector<8x8xf32>
    %108 = arith.mulf %107, %106 : vector<8x8xf32>
    %109 = arith.truncf %99 : vector<8x8xf32> to vector<8x8xbf16>
    %110 = vector.extract_strided_slice %6 {offsets = [0, 24], sizes = [8, 8], strides = [1, 1]} : vector<8x32xbf16> to vector<8x8xbf16>
    %cst_66 = arith.constant dense<0.000000e+00> : vector<8x8xf32>
    %111 = tpu.matmul %109, %110, %cst_66 {dimension_numbers = #tpu.dot_dimension_numbers<[1], [0], [0], [1], [0, 0, 1, 1], [], []>} : vector<8x8xbf16>, vector<8x8xbf16>, vector<8x8xf32> -> vector<8x8xf32>
    %112 = arith.addf %108, %111 : vector<8x8xf32>
    %c0_67 = arith.constant 0 : index
    %c24_68 = arith.constant 24 : index
    %113 = vector.load %arg14[%c0_67, %c24_68] : memref<8x32xf32, #tpu.memory_space<vmem>>, vector<8x8xf32>
    tpu.vector_store %arg14[%c0_67, %c24_68], %112 {strides = array<i32>} : memref<8x32xf32, #tpu.memory_space<vmem>>, vector<8x8xf32>,
    %c0_69 = arith.constant 0 : index
    %c3_70 = arith.constant 3 : index
    %114 = vector.load %arg12[%c0_69, %c3_70] : memref<8x4xf32, #tpu.memory_space<vmem>>, vector<8x1xf32>
    tpu.vector_store %arg12[%c0_69, %c3_70], %94 {strides = array<i32>} : memref<8x4xf32, #tpu.memory_space<vmem>>, vector<8x1xf32>,
    %c0_i32_71 = arith.constant 0 : i32
    %115 = arith.cmpi eq, %arg2, %c0_i32_71 : i32
    %116 = arith.extui %115 : i1 to i32
    %c0_i32_72 = arith.constant 0 : i32
    %117 = arith.cmpi ne, %116, %c0_i32_72 : i32
    scf.if %117 {
      %c0_73 = arith.constant 0 : index
      %c0_74 = arith.constant 0 : index
      %118 = vector.load %arg13[%c0_73, %c0_74] : memref<8x4xf32, #tpu.memory_space<vmem>>, vector<8x4xf32>
      %119 = tpu.reciprocal %118 {approx = true} : vector<8x4xf32> -> vector<8x4xf32>
      %c0_75 = arith.constant 0 : index
      %c0_76 = arith.constant 0 : index
      %120 = vector.load %arg14[%c0_75, %c0_76] : memref<8x32xf32, #tpu.memory_space<vmem>>, vector<8x8xf32>
      %121 = vector.extract_strided_slice %119 {offsets = [0, 0], sizes = [8, 1], strides = [1, 1]} : vector<8x4xf32> to vector<8x1xf32>
      %122 = vector.broadcast %121 : vector<8x1xf32> to vector<8x8xf32>
      %123 = arith.mulf %120, %122 : vector<8x8xf32>
      %124 = arith.truncf %123 : vector<8x8xf32> to vector<8x8xbf16>
      %c0_77 = arith.constant 0 : index
      %c0_78 = arith.constant 0 : index
      %125 = vector.load %arg11[%c0_77, %c0_78] : memref<8x32xbf16, #tpu.memory_space<vmem>>, vector<8x8xbf16>
      tpu.vector_store %arg11[%c0_77, %c0_78], %124 {strides = array<i32>} : memref<8x32xbf16, #tpu.memory_space<vmem>>, vector<8x8xbf16>,
      %c0_79 = arith.constant 0 : index
      %c8_80 = arith.constant 8 : index
      %126 = vector.load %arg14[%c0_79, %c8_80] : memref<8x32xf32, #tpu.memory_space<vmem>>, vector<8x8xf32>
      %127 = vector.extract_strided_slice %119 {offsets = [0, 1], sizes = [8, 1], strides = [1, 1]} : vector<8x4xf32> to vector<8x1xf32>
      %128 = vector.broadcast %127 : vector<8x1xf32> to vector<8x8xf32>
      %129 = arith.mulf %126, %128 : vector<8x8xf32>
      %130 = arith.truncf %129 : vector<8x8xf32> to vector<8x8xbf16>
      %c0_81 = arith.constant 0 : index
      %c8_82 = arith.constant 8 : index
      %131 = vector.load %arg11[%c0_81, %c8_82] : memref<8x32xbf16, #tpu.memory_space<vmem>>, vector<8x8xbf16>
      tpu.vector_store %arg11[%c0_81, %c8_82], %130 {strides = array<i32>} : memref<8x32xbf16, #tpu.memory_space<vmem>>, vector<8x8xbf16>,
      %c0_83 = arith.constant 0 : index
      %c16_84 = arith.constant 16 : index
      %132 = vector.load %arg14[%c0_83, %c16_84] : memref<8x32xf32, #tpu.memory_space<vmem>>, vector<8x8xf32>
      %133 = vector.extract_strided_slice %119 {offsets = [0, 2], sizes = [8, 1], strides = [1, 1]} : vector<8x4xf32> to vector<8x1xf32>
      %134 = vector.broadcast %133 : vector<8x1xf32> to vector<8x8xf32>
      %135 = arith.mulf %132, %134 : vector<8x8xf32>
      %136 = arith.truncf %135 : vector<8x8xf32> to vector<8x8xbf16>
      %c0_85 = arith.constant 0 : index
      %c16_86 = arith.constant 16 : index
      %137 = vector.load %arg11[%c0_85, %c16_86] : memref<8x32xbf16, #tpu.memory_space<vmem>>, vector<8x8xbf16>
      tpu.vector_store %arg11[%c0_85, %c16_86], %136 {strides = array<i32>} : memref<8x32xbf16, #tpu.memory_space<vmem>>, vector<8x8xbf16>,
      %c0_87 = arith.constant 0 : index
      %c24_88 = arith.constant 24 : index
      %138 = vector.load %arg14[%c0_87, %c24_88] : memref<8x32xf32, #tpu.memory_space<vmem>>, vector<8x8xf32>
      %139 = vector.extract_strided_slice %119 {offsets = [0, 3], sizes = [8, 1], strides = [1, 1]} : vector<8x4xf32> to vector<8x1xf32>
      %140 = vector.broadcast %139 : vector<8x1xf32> to vector<8x8xf32>
      %141 = arith.mulf %138, %140 : vector<8x8xf32>
      %142 = arith.truncf %141 : vector<8x8xf32> to vector<8x8xbf16>
      %c0_89 = arith.constant 0 : index
      %c24_90 = arith.constant 24 : index
      %143 = vector.load %arg11[%c0_89, %c24_90] : memref<8x32xbf16, #tpu.memory_space<vmem>>, vector<8x8xbf16>
      tpu.vector_store %arg11[%c0_89, %c24_90], %142 {strides = array<i32>} : memref<8x32xbf16, #tpu.memory_space<vmem>>, vector<8x8xbf16>,
      %c0_91 = arith.constant 0 : index
      %c0_92 = arith.constant 0 : index
      %144 = vector.load %arg11[%c0_91, %c0_92] : memref<8x32xbf16, #tpu.memory_space<vmem>>, vector<8x32xbf16>
      %c0_93 = arith.constant 0 : index
      %c0_94 = arith.constant 0 : index
      %145 = vector.load %arg8[%c0_93, %c0_94] : memref<32x32xbf16, #tpu.memory_space<vmem>>, vector<32x32xbf16>
      %cst_95 = arith.constant dense<0.000000e+00> : vector<8x32xf32>
      %146 = tpu.matmul %144, %145, %cst_95 {dimension_numbers = #tpu.dot_dimension_numbers<[1], [0], [0], [1], [0, 0, 1, 1], [], []>} : vector<8x32xbf16>, vector<32x32xbf16>, vector<8x32xf32> -> vector<8x32xf32>
      %c0_96 = arith.constant 0 : index
      %c0_97 = arith.constant 0 : index
      %147 = vector.load %arg9[%c0_96, %c0_97] : memref<1x32xf32, #tpu.memory_space<vmem>>, vector<1x32xf32>
      %148 = vector.broadcast %147 : vector<1x32xf32> to vector<8x32xf32>
      %149 = arith.addf %146, %148 : vector<8x32xf32>
      %c0_98 = arith.constant 0 : index
      %c0_99 = arith.constant 0 : index
      %c0_100 = arith.constant 0 : index
      %150 = vector.load %arg10[%c0_98, %c0_99, %c0_100] : memref<1x8x32xf32, #tpu.memory_space<vmem>>, vector<1x8x32xf32>
      %151 = vector.shape_cast %150 : vector<1x8x32xf32> to vector<8x32xf32>
      %152 = vector.shape_cast %149 : vector<8x32xf32> to vector<1x8x32xf32>
      tpu.vector_store %arg10[%c0_98, %c0_99, %c0_100], %152 {strides = array<i32>} : memref<1x8x32xf32, #tpu.memory_space<vmem>>, vector<1x8x32xf32>,
    } else {
    }
    return
  }
  func.func @transform_0(%arg0: i32, %arg1: i32, %arg2: i32) -> (i32, i32, i32) {
    %c0_i32 = arith.constant 0 : i32
    %c0_i32_0 = arith.constant 0 : i32
    return %arg0, %arg1, %c0_i32 : i32, i32, i32
  }
  func.func @transform_1(%arg0: i32, %arg1: i32, %arg2: i32) -> (i32, i32, i32) {
    %c0_i32 = arith.constant 0 : i32
    %c0_i32_0 = arith.constant 0 : i32
    return %arg0, %arg2, %c0_i32 : i32, i32, i32
  }
  func.func @transform_2(%arg0: i32, %arg1: i32, %arg2: i32) -> (i32, i32, i32) {
    %c0_i32 = arith.constant 0 : i32
    %c0_i32_0 = arith.constant 0 : i32
    return %arg0, %arg2, %c0_i32 : i32, i32, i32
  }
  func.func @transform_3(%arg0: i32, %arg1: i32, %arg2: i32) -> (i32, i32) {
    %c0_i32 = arith.constant 0 : i32
    %c0_i32_0 = arith.constant 0 : i32
    %c0_i32_1 = arith.constant 0 : i32
    return %c0_i32, %c0_i32_0 : i32, i32
  }
  func.func @transform_4(%arg0: i32, %arg1: i32, %arg2: i32) -> (i32, i32) {
    %c0_i32 = arith.constant 0 : i32
    %c0_i32_0 = arith.constant 0 : i32
    %c0_i32_1 = arith.constant 0 : i32
    return %c0_i32, %c0_i32_0 : i32, i32
  }
  func.func @transform_5(%arg0: i32, %arg1: i32, %arg2: i32) -> (i32, i32) {
    %c0_i32 = arith.constant 0 : i32
    %c0_i32_0 = arith.constant 0 : i32
    %c0_i32_1 = arith.constant 0 : i32
    return %c0_i32, %c0_i32_0 : i32, i32
  }
  func.func @transform_6(%arg0: i32, %arg1: i32, %arg2: i32) -> (i32, i32) {
    %c0_i32 = arith.constant 0 : i32
    %c0_i32_0 = arith.constant 0 : i32
    %c0_i32_1 = arith.constant 0 : i32
    return %c0_i32, %c0_i32_0 : i32, i32
  }
  func.func @transform_7(%arg0: i32, %arg1: i32, %arg2: i32) -> (i32, i32, i32) {
    %c0_i32 = arith.constant 0 : i32
    %c0_i32_0 = arith.constant 0 : i32
    return %arg0, %arg1, %c0_i32 : i32, i32, i32
  }
}

module attributes {stable_mosaic.version = 11 : i64} {
  func.func @_flash_attention_kernel(%arg0: i32, %arg1: i32, %arg2: i32, %arg3: memref<1x8x32xbf16, #tpu.memory_space<vmem>>, %arg4: memref<1x8x32xbf16, #tpu.memory_space<vmem>>, %arg5: memref<1x8x32xbf16, #tpu.memory_space<vmem>>, %arg6: memref<32x32xbf16, #tpu.memory_space<vmem>>, %arg7: memref<1x32xf32, #tpu.memory_space<vmem>>, %arg8: memref<32x32xbf16, #tpu.memory_space<vmem>>, %arg9: memref<1x32xf32, #tpu.memory_space<vmem>>, %arg10: memref<1x8x32xf32, #tpu.memory_space<vmem>>, %arg11: memref<8x32xbf16, #tpu.memory_space<vmem>>, %arg12: memref<8x4xf32, #tpu.memory_space<vmem>>, %arg13: memref<8x4xf32, #tpu.memory_space<vmem>>, %arg14: memref<8x32xf32, #tpu.memory_space<vmem>>) attributes {dimension_semantics = [#tpu.dimension_semantics<parallel>, #tpu.dimension_semantics<parallel>, #tpu.dimension_semantics<arbitrary>], iteration_bounds = array<i64: 2, 1, 1>, scalar_prefetch = 0 : i64, scratch_operands = 4 : i64, tpu.core_type = #tpu.core_type<tc>, window_params = [{transform_indices = @transform_0, window_bounds = array<i64: 1, 8, 32>}, {transform_indices = @transform_1, window_bounds = array<i64: 1, 8, 32>}, {transform_indices = @transform_2, window_bounds = array<i64: 1, 8, 32>}, {pipeline_mode = #tpu.pipeline_mode<synchronous>, transform_indices = @transform_3, window_bounds = array<i64: 32, 32>}, {pipeline_mode = #tpu.pipeline_mode<synchronous>, transform_indices = @transform_4, window_bounds = array<i64: 1, 32>}, {pipeline_mode = #tpu.pipeline_mode<synchronous>, transform_indices = @transform_5, window_bounds = array<i64: 32, 32>}, {pipeline_mode = #tpu.pipeline_mode<synchronous>, transform_indices = @transform_6, window_bounds = array<i64: 1, 32>}, {transform_indices = @transform_7, window_bounds = array<i64: 1, 8, 32>}]} {
    %c0_i32 = arith.constant 0 : i32
    %0 = arith.cmpi eq, %arg2, %c0_i32 : i32
    %1 = arith.extui %0 : i1 to i32
    %c0_i32_0 = arith.constant 0 : i32
    %2 = arith.cmpi ne, %1, %c0_i32_0 : i32
    scf.if %2 {
      %c0_73 = arith.constant 0 : index
      %c0_74 = arith.constant 0 : index
      %c0_75 = arith.constant 0 : index
      %118 = vector.load %arg3[%c0_73, %c0_74, %c0_75] : memref<1x8x32xbf16, #tpu.memory_space<vmem>>, vector<1x8x32xbf16>
      %119 = vector.shape_cast %118 : vector<1x8x32xbf16> to vector<8x32xbf16>
      %c0_76 = arith.constant 0 : index
      %c0_77 = arith.constant 0 : index
      %120 = vector.load %arg6[%c0_76, %c0_77] : memref<32x32xbf16, #tpu.memory_space<vmem>>, vector<32x32xbf16>
      %cst_78 = arith.constant dense<0.000000e+00> : vector<8x32xf32>
      %121 = tpu.matmul %119, %120, %cst_78 {dimension_numbers = #tpu.dot_dimension_numbers<[1], [0], [0], [1], [0, 0, 1, 1], [], []>} : vector<8x32xbf16>, vector<32x32xbf16>, vector<8x32xf32> -> vector<8x32xf32>
      %c0_79 = arith.constant 0 : index
      %c0_80 = arith.constant 0 : index
      %122 = vector.load %arg7[%c0_79, %c0_80] : memref<1x32xf32, #tpu.memory_space<vmem>>, vector<1x32xf32>
      %123 = vector.broadcast %122 : vector<1x32xf32> to vector<8x32xf32>
      %124 = arith.addf %121, %123 : vector<8x32xf32>
      %cst_81 = arith.constant 0.353553385 : f32
      %125 = vector.broadcast %cst_81 : f32 to vector<8x32xf32>
      %126 = arith.mulf %124, %125 : vector<8x32xf32>
      %127 = arith.truncf %126 : vector<8x32xf32> to vector<8x32xbf16>
      %c0_82 = arith.constant 0 : index
      %c0_83 = arith.constant 0 : index
      %128 = vector.load %arg11[%c0_82, %c0_83] : memref<8x32xbf16, #tpu.memory_space<vmem>>, vector<8x32xbf16>
      tpu.vector_store %arg11[%c0_82, %c0_83], %127 {strides = array<i32>} : memref<8x32xbf16, #tpu.memory_space<vmem>>, vector<8x32xbf16>,
      %cst_84 = arith.constant 0xFF800000 : f32
      %129 = vector.broadcast %cst_84 : f32 to vector<8x4xf32>
      %c0_85 = arith.constant 0 : index
      %c0_86 = arith.constant 0 : index
      %130 = vector.load %arg12[%c0_85, %c0_86] : memref<8x4xf32, #tpu.memory_space<vmem>>, vector<8x4xf32>
      tpu.vector_store %arg12[%c0_85, %c0_86], %129 {strides = array<i32>} : memref<8x4xf32, #tpu.memory_space<vmem>>, vector<8x4xf32>,
      %cst_87 = arith.constant 0.000000e+00 : f32
      %131 = vector.broadcast %cst_87 : f32 to vector<8x4xf32>
      %c0_88 = arith.constant 0 : index
      %c0_89 = arith.constant 0 : index
      %132 = vector.load %arg13[%c0_88, %c0_89] : memref<8x4xf32, #tpu.memory_space<vmem>>, vector<8x4xf32>
      tpu.vector_store %arg13[%c0_88, %c0_89], %131 {strides = array<i32>} : memref<8x4xf32, #tpu.memory_space<vmem>>, vector<8x4xf32>,
      %cst_90 = arith.constant 0.000000e+00 : f32
      %133 = vector.broadcast %cst_90 : f32 to vector<8x32xf32>
      %c0_91 = arith.constant 0 : index
      %c0_92 = arith.constant 0 : index
      %134 = vector.load %arg14[%c0_91, %c0_92] : memref<8x32xf32, #tpu.memory_space<vmem>>, vector<8x32xf32>
      tpu.vector_store %arg14[%c0_91, %c0_92], %133 {strides = array<i32>} : memref<8x32xf32, #tpu.memory_space<vmem>>, vector<8x32xf32>,
    } else {
    }
    %c0 = arith.constant 0 : index
    %c0_1 = arith.constant 0 : index
    %c0_2 = arith.constant 0 : index
    %3 = vector.load %arg4[%c0, %c0_1, %c0_2] : memref<1x8x32xbf16, #tpu.memory_space<vmem>>, vector<1x8x32xbf16>
    %4 = vector.shape_cast %3 : vector<1x8x32xbf16> to vector<8x32xbf16>
    %c0_3 = arith.constant 0 : index
    %c0_4 = arith.constant 0 : index
    %c0_5 = arith.constant 0 : index
    %5 = vector.load %arg5[%c0_3, %c0_4, %c0_5] : memref<1x8x32xbf16, #tpu.memory_space<vmem>>, vector<1x8x32xbf16>
    %6 = vector.shape_cast %5 : vector<1x8x32xbf16> to vector<8x32xbf16>
    %c0_6 = arith.constant 0 : index
    %c0_7 = arith.constant 0 : index
    %7 = vector.load %arg11[%c0_6, %c0_7] : memref<8x32xbf16, #tpu.memory_space<vmem>>, vector<8x8xbf16>
    %8 = vector.extract_strided_slice %4 {offsets = [0, 0], sizes = [8, 8], strides = [1, 1]} : vector<8x32xbf16> to vector<8x8xbf16>
    %cst = arith.constant dense<0.000000e+00> : vector<8x8xf32>
    %9 = tpu.matmul %7, %8, %cst {dimension_numbers = #tpu.dot_dimension_numbers<[1], [1], [0], [0], [0, 0, 1, 0], [], []>} : vector<8x8xbf16>, vector<8x8xbf16>, vector<8x8xf32> -> vector<8x8xf32>
    %c0_8 = arith.constant 0 : index
    %c0_9 = arith.constant 0 : index
    %10 = vector.load %arg12[%c0_8, %c0_9] : memref<8x4xf32, #tpu.memory_space<vmem>>, vector<8x1xf32>
    %cst_10 = arith.constant dense<0xFF800000> : vector<8xf32>
    %11 = vector.multi_reduction <maximumf>, %9, %cst_10 [1] : vector<8x8xf32> to vector<8xf32>
    %12 = vector.shape_cast %11 : vector<8xf32> to vector<8x1xf32>
    %13 = arith.maximumf %10, %12 : vector<8x1xf32>
    %14 = arith.subf %10, %13 : vector<8x1xf32>
    %15 = math.exp %14 : vector<8x1xf32>
    %16 = vector.broadcast %13 : vector<8x1xf32> to vector<8x8xf32>
    %17 = arith.subf %9, %16 : vector<8x8xf32>
    %18 = math.exp %17 : vector<8x8xf32>
    %c0_11 = arith.constant 0 : index
    %c0_12 = arith.constant 0 : index
    %19 = vector.load %arg13[%c0_11, %c0_12] : memref<8x4xf32, #tpu.memory_space<vmem>>, vector<8x1xf32>
    %20 = arith.mulf %15, %19 : vector<8x1xf32>
    %cst_13 = arith.constant dense<0.000000e+00> : vector<8xf32>
    %21 = vector.multi_reduction <add>, %18, %cst_13 [1] : vector<8x8xf32> to vector<8xf32>
    %22 = vector.shape_cast %21 : vector<8xf32> to vector<8x1xf32>
    %23 = arith.addf %20, %22 : vector<8x1xf32>
    %c0_14 = arith.constant 0 : index
    %c0_15 = arith.constant 0 : index
    %24 = vector.load %arg13[%c0_14, %c0_15] : memref<8x4xf32, #tpu.memory_space<vmem>>, vector<8x1xf32>
    tpu.vector_store %arg13[%c0_14, %c0_15], %23 {strides = array<i32>} : memref<8x4xf32, #tpu.memory_space<vmem>>, vector<8x1xf32>,
    %c0_16 = arith.constant 0 : index
    %c0_17 = arith.constant 0 : index
    %25 = vector.load %arg14[%c0_16, %c0_17] : memref<8x32xf32, #tpu.memory_space<vmem>>, vector<8x8xf32>
    %26 = vector.broadcast %15 : vector<8x1xf32> to vector<8x8xf32>
    %27 = arith.mulf %26, %25 : vector<8x8xf32>
    %28 = arith.truncf %18 : vector<8x8xf32> to vector<8x8xbf16>
    %29 = vector.extract_strided_slice %6 {offsets = [0, 0], sizes = [8, 8], strides = [1, 1]} : vector<8x32xbf16> to vector<8x8xbf16>
    %cst_18 = arith.constant dense<0.000000e+00> : vector<8x8xf32>
    %30 = tpu.matmul %28, %29, %cst_18 {dimension_numbers = #tpu.dot_dimension_numbers<[1], [0], [0], [1], [0, 0, 1, 1], [], []>} : vector<8x8xbf16>, vector<8x8xbf16>, vector<8x8xf32> -> vector<8x8xf32>
    %31 = arith.addf %27, %30 : vector<8x8xf32>
    %c0_19 = arith.constant 0 : index
    %c0_20 = arith.constant 0 : index
    %32 = vector.load %arg14[%c0_19, %c0_20] : memref<8x32xf32, #tpu.memory_space<vmem>>, vector<8x8xf32>
    tpu.vector_store %arg14[%c0_19, %c0_20], %31 {strides = array<i32>} : memref<8x32xf32, #tpu.memory_space<vmem>>, vector<8x8xf32>,
    %c0_21 = arith.constant 0 : index
    %c0_22 = arith.constant 0 : index
    %33 = vector.load %arg12[%c0_21, %c0_22] : memref<8x4xf32, #tpu.memory_space<vmem>>, vector<8x1xf32>
    tpu.vector_store %arg12[%c0_21, %c0_22], %13 {strides = array<i32>} : memref<8x4xf32, #tpu.memory_space<vmem>>, vector<8x1xf32>,
    %c0_23 = arith.constant 0 : index
    %c8 = arith.constant 8 : index
    %34 = vector.load %arg11[%c0_23, %c8] : memref<8x32xbf16, #tpu.memory_space<vmem>>, vector<8x8xbf16>
    %35 = vector.extract_strided_slice %4 {offsets = [0, 8], sizes = [8, 8], strides = [1, 1]} : vector<8x32xbf16> to vector<8x8xbf16>
    %cst_24 = arith.constant dense<0.000000e+00> : vector<8x8xf32>
    %36 = tpu.matmul %34, %35, %cst_24 {dimension_numbers = #tpu.dot_dimension_numbers<[1], [1], [0], [0], [0, 0, 1, 0], [], []>} : vector<8x8xbf16>, vector<8x8xbf16>, vector<8x8xf32> -> vector<8x8xf32>
    %c0_25 = arith.constant 0 : index
    %c1 = arith.constant 1 : index
    %37 = vector.load %arg12[%c0_25, %c1] : memref<8x4xf32, #tpu.memory_space<vmem>>, vector<8x1xf32>
    %cst_26 = arith.constant dense<0xFF800000> : vector<8xf32>
    %38 = vector.multi_reduction <maximumf>, %36, %cst_26 [1] : vector<8x8xf32> to vector<8xf32>
    %39 = vector.shape_cast %38 : vector<8xf32> to vector<8x1xf32>
    %40 = arith.maximumf %37, %39 : vector<8x1xf32>
    %41 = arith.subf %37, %40 : vector<8x1xf32>
    %42 = math.exp %41 : vector<8x1xf32>
    %43 = vector.broadcast %40 : vector<8x1xf32> to vector<8x8xf32>
    %44 = arith.subf %36, %43 : vector<8x8xf32>
    %45 = math.exp %44 : vector<8x8xf32>
    %c0_27 = arith.constant 0 : index
    %c1_28 = arith.constant 1 : index
    %46 = vector.load %arg13[%c0_27, %c1_28] : memref<8x4xf32, #tpu.memory_space<vmem>>, vector<8x1xf32>
    %47 = arith.mulf %42, %46 : vector<8x1xf32>
    %cst_29 = arith.constant dense<0.000000e+00> : vector<8xf32>
    %48 = vector.multi_reduction <add>, %45, %cst_29 [1] : vector<8x8xf32> to vector<8xf32>
    %49 = vector.shape_cast %48 : vector<8xf32> to vector<8x1xf32>
    %50 = arith.addf %47, %49 : vector<8x1xf32>
    %c0_30 = arith.constant 0 : index
    %c1_31 = arith.constant 1 : index
    %51 = vector.load %arg13[%c0_30, %c1_31] : memref<8x4xf32, #tpu.memory_space<vmem>>, vector<8x1xf32>
    tpu.vector_store %arg13[%c0_30, %c1_31], %50 {strides = array<i32>} : memref<8x4xf32, #tpu.memory_space<vmem>>, vector<8x1xf32>,
    %c0_32 = arith.constant 0 : index
    %c8_33 = arith.constant 8 : index
    %52 = vector.load %arg14[%c0_32, %c8_33] : memref<8x32xf32, #tpu.memory_space<vmem>>, vector<8x8xf32>
    %53 = vector.broadcast %42 : vector<8x1xf32> to vector<8x8xf32>
    %54 = arith.mulf %53, %52 : vector<8x8xf32>
    %55 = arith.truncf %45 : vector<8x8xf32> to vector<8x8xbf16>
    %56 = vector.extract_strided_slice %6 {offsets = [0, 8], sizes = [8, 8], strides = [1, 1]} : vector<8x32xbf16> to vector<8x8xbf16>
    %cst_34 = arith.constant dense<0.000000e+00> : vector<8x8xf32>
    %57 = tpu.matmul %55, %56, %cst_34 {dimension_numbers = #tpu.dot_dimension_numbers<[1], [0], [0], [1], [0, 0, 1, 1], [], []>} : vector<8x8xbf16>, vector<8x8xbf16>, vector<8x8xf32> -> vector<8x8xf32>
    %58 = arith.addf %54, %57 : vector<8x8xf32>
    %c0_35 = arith.constant 0 : index
    %c8_36 = arith.constant 8 : index
    %59 = vector.load %arg14[%c0_35, %c8_36] : memref<8x32xf32, #tpu.memory_space<vmem>>, vector<8x8xf32>
    tpu.vector_store %arg14[%c0_35, %c8_36], %58 {strides = array<i32>} : memref<8x32xf32, #tpu.memory_space<vmem>>, vector<8x8xf32>,
    %c0_37 = arith.constant 0 : index
    %c1_38 = arith.constant 1 : index
    %60 = vector.load %arg12[%c0_37, %c1_38] : memref<8x4xf32, #tpu.memory_space<vmem>>, vector<8x1xf32>
    tpu.vector_store %arg12[%c0_37, %c1_38], %40 {strides = array<i32>} : memref<8x4xf32, #tpu.memory_space<vmem>>, vector<8x1xf32>,
    %c0_39 = arith.constant 0 : index
    %c16 = arith.constant 16 : index
    %61 = vector.load %arg11[%c0_39, %c16] : memref<8x32xbf16, #tpu.memory_space<vmem>>, vector<8x8xbf16>
    %62 = vector.extract_strided_slice %4 {offsets = [0, 16], sizes = [8, 8], strides = [1, 1]} : vector<8x32xbf16> to vector<8x8xbf16>
    %cst_40 = arith.constant dense<0.000000e+00> : vector<8x8xf32>
    %63 = tpu.matmul %61, %62, %cst_40 {dimension_numbers = #tpu.dot_dimension_numbers<[1], [1], [0], [0], [0, 0, 1, 0], [], []>} : vector<8x8xbf16>, vector<8x8xbf16>, vector<8x8xf32> -> vector<8x8xf32>
    %c0_41 = arith.constant 0 : index
    %c2 = arith.constant 2 : index
    %64 = vector.load %arg12[%c0_41, %c2] : memref<8x4xf32, #tpu.memory_space<vmem>>, vector<8x1xf32>
    %cst_42 = arith.constant dense<0xFF800000> : vector<8xf32>
    %65 = vector.multi_reduction <maximumf>, %63, %cst_42 [1] : vector<8x8xf32> to vector<8xf32>
    %66 = vector.shape_cast %65 : vector<8xf32> to vector<8x1xf32>
    %67 = arith.maximumf %64, %66 : vector<8x1xf32>
    %68 = arith.subf %64, %67 : vector<8x1xf32>
    %69 = math.exp %68 : vector<8x1xf32>
    %70 = vector.broadcast %67 : vector<8x1xf32> to vector<8x8xf32>
    %71 = arith.subf %63, %70 : vector<8x8xf32>
    %72 = math.exp %71 : vector<8x8xf32>
    %c0_43 = arith.constant 0 : index
    %c2_44 = arith.constant 2 : index
    %73 = vector.load %arg13[%c0_43, %c2_44] : memref<8x4xf32, #tpu.memory_space<vmem>>, vector<8x1xf32>
    %74 = arith.mulf %69, %73 : vector<8x1xf32>
    %cst_45 = arith.constant dense<0.000000e+00> : vector<8xf32>
    %75 = vector.multi_reduction <add>, %72, %cst_45 [1] : vector<8x8xf32> to vector<8xf32>
    %76 = vector.shape_cast %75 : vector<8xf32> to vector<8x1xf32>
    %77 = arith.addf %74, %76 : vector<8x1xf32>
    %c0_46 = arith.constant 0 : index
    %c2_47 = arith.constant 2 : index
    %78 = vector.load %arg13[%c0_46, %c2_47] : memref<8x4xf32, #tpu.memory_space<vmem>>, vector<8x1xf32>
    tpu.vector_store %arg13[%c0_46, %c2_47], %77 {strides = array<i32>} : memref<8x4xf32, #tpu.memory_space<vmem>>, vector<8x1xf32>,
    %c0_48 = arith.constant 0 : index
    %c16_49 = arith.constant 16 : index
    %79 = vector.load %arg14[%c0_48, %c16_49] : memref<8x32xf32, #tpu.memory_space<vmem>>, vector<8x8xf32>
    %80 = vector.broadcast %69 : vector<8x1xf32> to vector<8x8xf32>
    %81 = arith.mulf %80, %79 : vector<8x8xf32>
    %82 = arith.truncf %72 : vector<8x8xf32> to vector<8x8xbf16>
    %83 = vector.extract_strided_slice %6 {offsets = [0, 16], sizes = [8, 8], strides = [1, 1]} : vector<8x32xbf16> to vector<8x8xbf16>
    %cst_50 = arith.constant dense<0.000000e+00> : vector<8x8xf32>
    %84 = tpu.matmul %82, %83, %cst_50 {dimension_numbers = #tpu.dot_dimension_numbers<[1], [0], [0], [1], [0, 0, 1, 1], [], []>} : vector<8x8xbf16>, vector<8x8xbf16>, vector<8x8xf32> -> vector<8x8xf32>
    %85 = arith.addf %81, %84 : vector<8x8xf32>
    %c0_51 = arith.constant 0 : index
    %c16_52 = arith.constant 16 : index
    %86 = vector.load %arg14[%c0_51, %c16_52] : memref<8x32xf32, #tpu.memory_space<vmem>>, vector<8x8xf32>
    tpu.vector_store %arg14[%c0_51, %c16_52], %85 {strides = array<i32>} : memref<8x32xf32, #tpu.memory_space<vmem>>, vector<8x8xf32>,
    %c0_53 = arith.constant 0 : index
    %c2_54 = arith.constant 2 : index
    %87 = vector.load %arg12[%c0_53, %c2_54] : memref<8x4xf32, #tpu.memory_space<vmem>>, vector<8x1xf32>
    tpu.vector_store %arg12[%c0_53, %c2_54], %67 {strides = array<i32>} : memref<8x4xf32, #tpu.memory_space<vmem>>, vector<8x1xf32>,
    %c0_55 = arith.constant 0 : index
    %c24 = arith.constant 24 : index
    %88 = vector.load %arg11[%c0_55, %c24] : memref<8x32xbf16, #tpu.memory_space<vmem>>, vector<8x8xbf16>
    %89 = vector.extract_strided_slice %4 {offsets = [0, 24], sizes = [8, 8], strides = [1, 1]} : vector<8x32xbf16> to vector<8x8xbf16>
    %cst_56 = arith.constant dense<0.000000e+00> : vector<8x8xf32>
    %90 = tpu.matmul %88, %89, %cst_56 {dimension_numbers = #tpu.dot_dimension_numbers<[1], [1], [0], [0], [0, 0, 1, 0], [], []>} : vector<8x8xbf16>, vector<8x8xbf16>, vector<8x8xf32> -> vector<8x8xf32>
    %c0_57 = arith.constant 0 : index
    %c3 = arith.constant 3 : index
    %91 = vector.load %arg12[%c0_57, %c3] : memref<8x4xf32, #tpu.memory_space<vmem>>, vector<8x1xf32>
    %cst_58 = arith.constant dense<0xFF800000> : vector<8xf32>
    %92 = vector.multi_reduction <maximumf>, %90, %cst_58 [1] : vector<8x8xf32> to vector<8xf32>
    %93 = vector.shape_cast %92 : vector<8xf32> to vector<8x1xf32>
    %94 = arith.maximumf %91, %93 : vector<8x1xf32>
    %95 = arith.subf %91, %94 : vector<8x1xf32>
    %96 = math.exp %95 : vector<8x1xf32>
    %97 = vector.broadcast %94 : vector<8x1xf32> to vector<8x8xf32>
    %98 = arith.subf %90, %97 : vector<8x8xf32>
    %99 = math.exp %98 : vector<8x8xf32>
    %c0_59 = arith.constant 0 : index
    %c3_60 = arith.constant 3 : index
    %100 = vector.load %arg13[%c0_59, %c3_60] : memref<8x4xf32, #tpu.memory_space<vmem>>, vector<8x1xf32>
    %101 = arith.mulf %96, %100 : vector<8x1xf32>
    %cst_61 = arith.constant dense<0.000000e+00> : vector<8xf32>
    %102 = vector.multi_reduction <add>, %99, %cst_61 [1] : vector<8x8xf32> to vector<8xf32>
    %103 = vector.shape_cast %102 : vector<8xf32> to vector<8x1xf32>
    %104 = arith.addf %101, %103 : vector<8x1xf32>
    %c0_62 = arith.constant 0 : index
    %c3_63 = arith.constant 3 : index
    %105 = vector.load %arg13[%c0_62, %c3_63] : memref<8x4xf32, #tpu.memory_space<vmem>>, vector<8x1xf32>
    tpu.vector_store %arg13[%c0_62, %c3_63], %104 {strides = array<i32>} : memref<8x4xf32, #tpu.memory_space<vmem>>, vector<8x1xf32>,
    %c0_64 = arith.constant 0 : index
    %c24_65 = arith.constant 24 : index
    %106 = vector.load %arg14[%c0_64, %c24_65] : memref<8x32xf32, #tpu.memory_space<vmem>>, vector<8x8xf32>
    %107 = vector.broadcast %96 : vector<8x1xf32> to vector<8x8xf32>
    %108 = arith.mulf %107, %106 : vector<8x8xf32>
    %109 = arith.truncf %99 : vector<8x8xf32> to vector<8x8xbf16>
    %110 = vector.extract_strided_slice %6 {offsets = [0, 24], sizes = [8, 8], strides = [1, 1]} : vector<8x32xbf16> to vector<8x8xbf16>
    %cst_66 = arith.constant dense<0.000000e+00> : vector<8x8xf32>
    %111 = tpu.matmul %109, %110, %cst_66 {dimension_numbers = #tpu.dot_dimension_numbers<[1], [0], [0], [1], [0, 0, 1, 1], [], []>} : vector<8x8xbf16>, vector<8x8xbf16>, vector<8x8xf32> -> vector<8x8xf32>
    %112 = arith.addf %108, %111 : vector<8x8xf32>
    %c0_67 = arith.constant 0 : index
    %c24_68 = arith.constant 24 : index
    %113 = vector.load %arg14[%c0_67, %c24_68] : memref<8x32xf32, #tpu.memory_space<vmem>>, vector<8x8xf32>
    tpu.vector_store %arg14[%c0_67, %c24_68], %112 {strides = array<i32>} : memref<8x32xf32, #tpu.memory_space<vmem>>, vector<8x8xf32>,
    %c0_69 = arith.constant 0 : index
    %c3_70 = arith.constant 3 : index
    %114 = vector.load %arg12[%c0_69, %c3_70] : memref<8x4xf32, #tpu.memory_space<vmem>>, vector<8x1xf32>
    tpu.vector_store %arg12[%c0_69, %c3_70], %94 {strides = array<i32>} : memref<8x4xf32, #tpu.memory_space<vmem>>, vector<8x1xf32>,
    %c0_i32_71 = arith.constant 0 : i32
    %115 = arith.cmpi eq, %arg2, %c0_i32_71 : i32
    %116 = arith.extui %115 : i1 to i32
    %c0_i32_72 = arith.constant 0 : i32
    %117 = arith.cmpi ne, %116, %c0_i32_72 : i32
    scf.if %117 {
      %c0_73 = arith.constant 0 : index
      %c0_74 = arith.constant 0 : index
      %118 = vector.load %arg13[%c0_73, %c0_74] : memref<8x4xf32, #tpu.memory_space<vmem>>, vector<8x4xf32>
      %119 = tpu.reciprocal %118 {approx = true} : vector<8x4xf32> -> vector<8x4xf32>
      %c0_75 = arith.constant 0 : index
      %c0_76 = arith.constant 0 : index
      %120 = vector.load %arg14[%c0_75, %c0_76] : memref<8x32xf32, #tpu.memory_space<vmem>>, vector<8x8xf32>
      %121 = vector.extract_strided_slice %119 {offsets = [0, 0], sizes = [8, 1], strides = [1, 1]} : vector<8x4xf32> to vector<8x1xf32>
      %122 = vector.broadcast %121 : vector<8x1xf32> to vector<8x8xf32>
      %123 = arith.mulf %120, %122 : vector<8x8xf32>
      %124 = arith.truncf %123 : vector<8x8xf32> to vector<8x8xbf16>
      %c0_77 = arith.constant 0 : index
      %c0_78 = arith.constant 0 : index
      %125 = vector.load %arg11[%c0_77, %c0_78] : memref<8x32xbf16, #tpu.memory_space<vmem>>, vector<8x8xbf16>
      tpu.vector_store %arg11[%c0_77, %c0_78], %124 {strides = array<i32>} : memref<8x32xbf16, #tpu.memory_space<vmem>>, vector<8x8xbf16>,
      %c0_79 = arith.constant 0 : index
      %c8_80 = arith.constant 8 : index
      %126 = vector.load %arg14[%c0_79, %c8_80] : memref<8x32xf32, #tpu.memory_space<vmem>>, vector<8x8xf32>
      %127 = vector.extract_strided_slice %119 {offsets = [0, 1], sizes = [8, 1], strides = [1, 1]} : vector<8x4xf32> to vector<8x1xf32>
      %128 = vector.broadcast %127 : vector<8x1xf32> to vector<8x8xf32>
      %129 = arith.mulf %126, %128 : vector<8x8xf32>
      %130 = arith.truncf %129 : vector<8x8xf32> to vector<8x8xbf16>
      %c0_81 = arith.constant 0 : index
      %c8_82 = arith.constant 8 : index
      %131 = vector.load %arg11[%c0_81, %c8_82] : memref<8x32xbf16, #tpu.memory_space<vmem>>, vector<8x8xbf16>
      tpu.vector_store %arg11[%c0_81, %c8_82], %130 {strides = array<i32>} : memref<8x32xbf16, #tpu.memory_space<vmem>>, vector<8x8xbf16>,
      %c0_83 = arith.constant 0 : index
      %c16_84 = arith.constant 16 : index
      %132 = vector.load %arg14[%c0_83, %c16_84] : memref<8x32xf32, #tpu.memory_space<vmem>>, vector<8x8xf32>
      %133 = vector.extract_strided_slice %119 {offsets = [0, 2], sizes = [8, 1], strides = [1, 1]} : vector<8x4xf32> to vector<8x1xf32>
      %134 = vector.broadcast %133 : vector<8x1xf32> to vector<8x8xf32>
      %135 = arith.mulf %132, %134 : vector<8x8xf32>
      %136 = arith.truncf %135 : vector<8x8xf32> to vector<8x8xbf16>
      %c0_85 = arith.constant 0 : index
      %c16_86 = arith.constant 16 : index
      %137 = vector.load %arg11[%c0_85, %c16_86] : memref<8x32xbf16, #tpu.memory_space<vmem>>, vector<8x8xbf16>
      tpu.vector_store %arg11[%c0_85, %c16_86], %136 {strides = array<i32>} : memref<8x32xbf16, #tpu.memory_space<vmem>>, vector<8x8xbf16>,
      %c0_87 = arith.constant 0 : index
      %c24_88 = arith.constant 24 : index
      %138 = vector.load %arg14[%c0_87, %c24_88] : memref<8x32xf32, #tpu.memory_space<vmem>>, vector<8x8xf32>
      %139 = vector.extract_strided_slice %119 {offsets = [0, 3], sizes = [8, 1], strides = [1, 1]} : vector<8x4xf32> to vector<8x1xf32>
      %140 = vector.broadcast %139 : vector<8x1xf32> to vector<8x8xf32>
      %141 = arith.mulf %138, %140 : vector<8x8xf32>
      %142 = arith.truncf %141 : vector<8x8xf32> to vector<8x8xbf16>
      %c0_89 = arith.constant 0 : index
      %c24_90 = arith.constant 24 : index
      %143 = vector.load %arg11[%c0_89, %c24_90] : memref<8x32xbf16, #tpu.memory_space<vmem>>, vector<8x8xbf16>
      tpu.vector_store %arg11[%c0_89, %c24_90], %142 {strides = array<i32>} : memref<8x32xbf16, #tpu.memory_space<vmem>>, vector<8x8xbf16>,
      %c0_91 = arith.constant 0 : index
      %c0_92 = arith.constant 0 : index
      %144 = vector.load %arg11[%c0_91, %c0_92] : memref<8x32xbf16, #tpu.memory_space<vmem>>, vector<8x32xbf16>
      %c0_93 = arith.constant 0 : index
      %c0_94 = arith.constant 0 : index
      %145 = vector.load %arg8[%c0_93, %c0_94] : memref<32x32xbf16, #tpu.memory_space<vmem>>, vector<32x32xbf16>
      %cst_95 = arith.constant dense<0.000000e+00> : vector<8x32xf32>
      %146 = tpu.matmul %144, %145, %cst_95 {dimension_numbers = #tpu.dot_dimension_numbers<[1], [0], [0], [1], [0, 0, 1, 1], [], []>} : vector<8x32xbf16>, vector<32x32xbf16>, vector<8x32xf32> -> vector<8x32xf32>
      %c0_96 = arith.constant 0 : index
      %c0_97 = arith.constant 0 : index
      %147 = vector.load %arg9[%c0_96, %c0_97] : memref<1x32xf32, #tpu.memory_space<vmem>>, vector<1x32xf32>
      %148 = vector.broadcast %147 : vector<1x32xf32> to vector<8x32xf32>
      %149 = arith.addf %146, %148 : vector<8x32xf32>
      %c0_98 = arith.constant 0 : index
      %c0_99 = arith.constant 0 : index
      %c0_100 = arith.constant 0 : index
      %150 = vector.load %arg10[%c0_98, %c0_99, %c0_100] : memref<1x8x32xf32, #tpu.memory_space<vmem>>, vector<1x8x32xf32>
      %151 = vector.shape_cast %150 : vector<1x8x32xf32> to vector<8x32xf32>
      %152 = vector.shape_cast %149 : vector<8x32xf32> to vector<1x8x32xf32>
      tpu.vector_store %arg10[%c0_98, %c0_99, %c0_100], %152 {strides = array<i32>} : memref<1x8x32xf32, #tpu.memory_space<vmem>>, vector<1x8x32xf32>,
    } else {
    }
    return
  }
  func.func @transform_0(%arg0: i32, %arg1: i32, %arg2: i32) -> (i32, i32, i32) {
    %c0_i32 = arith.constant 0 : i32
    %c0_i32_0 = arith.constant 0 : i32
    return %arg0, %arg1, %c0_i32 : i32, i32, i32
  }
  func.func @transform_1(%arg0: i32, %arg1: i32, %arg2: i32) -> (i32, i32, i32) {
    %c0_i32 = arith.constant 0 : i32
    %c0_i32_0 = arith.constant 0 : i32
    return %arg0, %arg2, %c0_i32 : i32, i32, i32
  }
  func.func @transform_2(%arg0: i32, %arg1: i32, %arg2: i32) -> (i32, i32, i32) {
    %c0_i32 = arith.constant 0 : i32
    %c0_i32_0 = arith.constant 0 : i32
    return %arg0, %arg2, %c0_i32 : i32, i32, i32
  }
  func.func @transform_3(%arg0: i32, %arg1: i32, %arg2: i32) -> (i32, i32) {
    %c0_i32 = arith.constant 0 : i32
    %c0_i32_0 = arith.constant 0 : i32
    %c0_i32_1 = arith.constant 0 : i32
    return %c0_i32, %c0_i32_0 : i32, i32
  }
  func.func @transform_4(%arg0: i32, %arg1: i32, %arg2: i32) -> (i32, i32) {
    %c0_i32 = arith.constant 0 : i32
    %c0_i32_0 = arith.constant 0 : i32
    %c0_i32_1 = arith.constant 0 : i32
    return %c0_i32, %c0_i32_0 : i32, i32
  }
  func.func @transform_5(%arg0: i32, %arg1: i32, %arg2: i32) -> (i32, i32) {
    %c0_i32 = arith.constant 0 : i32
    %c0_i32_0 = arith.constant 0 : i32
    %c0_i32_1 = arith.constant 0 : i32
    return %c0_i32, %c0_i32_0 : i32, i32
  }
  func.func @transform_6(%arg0: i32, %arg1: i32, %arg2: i32) -> (i32, i32) {
    %c0_i32 = arith.constant 0 : i32
    %c0_i32_0 = arith.constant 0 : i32
    %c0_i32_1 = arith.constant 0 : i32
    return %c0_i32, %c0_i32_0 : i32, i32
  }
  func.func @transform_7(%arg0: i32, %arg1: i32, %arg2: i32) -> (i32, i32, i32) {
    %c0_i32 = arith.constant 0 : i32
    %c0_i32_0 = arith.constant 0 : i32
    return %arg0, %arg1, %c0_i32 : i32, i32, i32
  }
}

</mosaic_0001>

<bundles_post_ra>
// kernel: tpu_custom_call.1
= control target key start
LH: loop header
LB: loop body
LE: loop exit
PB: predicated region body
PF: predicated region fallthrough
CT: control target
= control target key end

     0   :  { %s1851_s0 = inlined_call_operand.hbm [shape: bf16[2,8,32], index: 0, kind: input, shape index: {}]   ;;  %s1852_s1 = inlined_call_operand.hbm [shape: bf16[2,8,32], index: 1, kind: input, shape index: {}]   ;;  %s1853_s2 = inlined_call_operand.hbm [shape: bf16[2,8,32], index: 2, kind: input, shape index: {}]   ;;  %s1854_s3 = inlined_call_operand.hbm [shape: bf16[32,32], index: 3, kind: input, shape index: {}]   ;;  %s1855_s4 = inlined_call_operand.vmem [shape: f32[1,32], index: 4, kind: input, shape index: {}]   ;;  %s1856_s5 = inlined_call_operand.hbm [shape: bf16[32,32], index: 5, kind: input, shape index: {}]   ;;  %s1857_s6 = inlined_call_operand.vmem [shape: f32[1,32], index: 6, kind: input, shape index: {}]   ;;  %s1858_s7 = inlined_call_operand.hbm [shape: f32[2,8,32], index: 7, kind: output, shape index: {}]  }
   0x1   :  { %1870 = sst [smem:[#allocation28_spill]] %s1852_s1 }
   0x2   :  { %1871 = sst [smem:[#allocation29_spill]] %s1854_s3 }
   0x3   :  { %1872 = sst [smem:[#allocation30_spill]] %s1856_s5 }
   0x4   :  { %1873 = sst [smem:[#allocation31_spill]] %s1857_s6 }
   0x5   :  { %12 = vsyncpa [#allocation7], 0 }
   0x6   :  { %14 = vsyncpa [#allocation7 + $0x1], 0 }
   0x7   :  { %15 = vsyncpa [#allocation10], 0 }
   0x8   :  { %17 = vsyncpa [#allocation10 + $0x1], 0 }
   0x9   :  { %18 = vsyncpa [#allocation13], 0 }
   0xa   :  { %19 = vsyncpa [#allocation8], 0 }
   0xb   :  { %21 = vsyncpa [#allocation8 + $0x1], 0  ;;  %s1566_s24 = smov 0   ;;  %s1568_s25 = smov 0  }
   0xc   :  { %s1570_s26 = smov 0   ;;  %s1572_s27 = smov 0  }
   0xd   :  { %s1574_s28 = smov 0   ;;  %s1576_s29 = smov 0  }
   0xe LB: > { %1874 = sst [smem:[#allocation20_spill]] %s1488_s24  ;;  %s1597_s30 = sadd.s32 4294967295, %s1508_s29   ;;  %s1508_s29 = sphi %s1576_s29, %s27_s29   ;;  %s1504_s28 = sphi %s1574_s28, %s1903_s28   ;;  %s1500_s27 = sphi %s1572_s27, %s1902_s27   ;;  %s1496_s26 = sphi %s1570_s26, %s1901_s26   ;;  %s1492_s25 = sphi %s1568_s25, %s1905_s25   ;;  %s1488_s24 = sphi %s1566_s24, %s1904_s24  }
   0xf   : > { %1875 = sst [smem:[#allocation21_spill]] %s1496_s26  ;;  %p1080_p0 = scmp.ge.s32.totalorder %s1508_s29, 1 }
  0x10   : > { %1876 = sst [smem:[#allocation22_spill]] %s1504_s28  ;;  %p69_p1 = scmp.eq.s32.totalorder %s1597_s30, 0 }
  0x11   : > { %1877 = sst [smem:[#allocation23_spill]] %s1508_s29  ;;  %p247_p2 = scmp.lt.s32.totalorder %s1508_s29, 3 }
  0x12   : > { %s1878_s3 = sld [smem:[#allocation29_spill]]  ;;  %s1510_s12 = smov [#allocation12]  }
  0x13   : > { %p1605_p3 = pnand %p1080_p0, %p247_p2  ;;  %s260_s13 = sshll.u32 %s1510_s12, 4  ;;  %s261_s13 = int_to_ptr.vmem [resolvable:$true] %s260_s13 }
  0x14   : > { %s1859_s15 = smov 64   ;;  %s1860_s16 = smov 4  }
  0x15   : > { %p1147_p4 = pneg %p1605_p3  ;;  %s1079_s17 = sadd.s32 4294967294, %s1508_s29  }
  0x16   : > { %s46_s18 = sadd.s32 1, %s1504_s28  ;;  %s55_s19 = sadd.s32 1, %s1496_s26 }
  0x17   : > { %p1613_p5 = pnand %p1147_p4, %p69_p1  ;;  %p48_p7 = scmp.ge.s32.totalorder %s46_s18, 2 }
  0x18   : > { %s258_s10 = sshll.u32 %s1878_s3, 4  ;;  %p62_p8 = scmp.ne.s32.totalorder %s1496_s26, %s1492_s25  ;;  %s259_s10 = int_to_ptr.hbm [resolvable:$true] %s258_s10 }
  0x19   : > { %1150 = dma.hbm_to_vmem [thread:$0]  (!%p1613_p5), %s259_s10, 256, %s261_s13, [#allocation13], %s1859_s15, %s1859_s15, %s1860_s16  }
  0x1a   : > { %p63_p9 = scmp.eq.s32.totalorder %s1508_s29, 0  ;;  %p68_p10 = scmp.ne.s32.totalorder %s1492_s25, %s1488_s24 }
  0x1b   : > { %s1907_s18 = smov (%p48_p7, %s46_s18), 0  ;;  %p234_p13 = scmp.eq.s32.totalorder %s1597_s30, 1 }
  0x1c   : > { %1881 = sst [smem:[#allocation24_spill]] %s1907_s18  ;;  %p1633_p11 = por %p63_p9, %p62_p8 }
  0x1d   : > { %p1639_p12 = por %p69_p1, %p68_p10  ;;  %s50_s22 = ssub.s32 %s1504_s28, %s1907_s18 }
  0x1e   : > { %p53_p0 = scmp.eq.s32.totalorder %s50_s22, 0  ;;  %p240_p2 = scmp.eq.s32.totalorder %s1079_s17, 1 }
  0x1f   : > { %p1646_p4 = por %p234_p13, %p62_p8  ;;  %p1170_p7 = scmp.lt.s32.totalorder %s1508_s29, 2 }
  0x20   : > { %s1652_s8 = scalar_select %p53_p0, %s1496_s26, %s55_s19  }
  0x21   : > { %s1884_s23 = scalar_select %p1646_p4, 1, 0 }
  0x22   : > { %1886 = sst [smem:[#allocation26_spill]] %s1652_s8  ;;  %p1654_p9 = por %p240_p2, %p68_p10 }
  0x23   : > { %1885 = sst [smem:[#allocation25_spill]] %s1884_s23  ;;  %s294_s10 = sand.u32 1, %s1496_s26  }
  0x24   : > { %s1887_s9 = scalar_select %p1654_p9, 1, 0 }
  0x25   : > { %s1659_s12 = sshll.u32 %s294_s10, 2  ;;  %s1085_s13 = sshll.u32 %s1504_s28, 2 }
  0x26   : > { %1888 = sst [smem:[#allocation27_spill]] %s1887_s9  ;;  %p1664_p6 = pnand %p1170_p7, %p1633_p11 }
  0x27   : > { %s314_s22 = sand.u32 1, %s1508_s29   ;;  %s1890_s1 = sld [smem:[#allocation28_spill]] }
  0x28   : > { %s318_s18 = scalar_lea.vmem [#allocation9], %s1659_s12  ;;  %s315_s28 = scalar_lea.sflag [#allocation10], %s314_s22 }
  0x29   : > { %s327_s8 = sshll.u32 %s318_s18, 4  ;;  %s1891_s5 = sld [smem:[#allocation30_spill]]  ;;  %s328_s8 = int_to_ptr.vmem [resolvable:$true] %s327_s8 }
  0x2a   : > { %s1513_s29 = smov [#allocation14]   ;;  %s1892_s15 = smov 4  }
  0x2b   : > { %s277_s24 = sshll.u32 %s1513_s29, 4  ;;  %s303_s22 = scalar_lea.hbm %s1851_s0, %s1085_s13  ;;  %s278_s24 = int_to_ptr.vmem [resolvable:$true] %s277_s24 }
  0x2c   : > { %s295_s26 = scalar_lea.sflag [#allocation7], %s294_s10  ;;  %s343_s14 = scalar_lea.hbm %s1853_s2, %s1085_s13 }
  0x2d   : > { %s323_s16 = scalar_lea.hbm %s1890_s1, %s1085_s13  ;;  %s338_s6 = scalar_lea.vmem [#allocation11], %s1659_s12 }
  0x2e   : > { %s325_s3 = sshll.u32 %s323_s16, 4  ;;  %s1893_s16 = smov 64   ;;  %s326_s3 = int_to_ptr.hbm [resolvable:$true] %s325_s3 }
  0x2f   : > { %1160 = dma.hbm_to_vmem [thread:$0]  (!%p1664_p6), %s326_s3, 64, %s328_s8, %s315_s28  }
  0x30   : > { %s275_s9 = sshll.u32 %s1891_s5, 4  ;;  %s305_s3 = sshll.u32 %s303_s22, 4  ;;  %s276_s9 = int_to_ptr.hbm [resolvable:$true] %s275_s9  ;;  %s306_s3 = int_to_ptr.hbm [resolvable:$true] %s305_s3 }
  0x31   : > { %1153 = dma.hbm_to_vmem [thread:$0]  (!%p1613_p5), %s276_s9, 256, %s278_s24, [#allocation13], %s1893_s16, %s1893_s16, %s1892_s15  }
  0x32   : > { %s298_s8 = scalar_lea.vmem [#allocation6], %s1659_s12  ;;  %s345_s5 = sshll.u32 %s343_s14, 4  ;;  %s346_s5 = int_to_ptr.hbm [resolvable:$true] %s345_s5 }
  0x33   : > { %s307_s1 = sshll.u32 %s298_s8, 4  ;;  %s347_s23 = sshll.u32 %s338_s6, 4  ;;  %s308_s1 = int_to_ptr.vmem [resolvable:$true] %s307_s1  ;;  %s348_s23 = int_to_ptr.vmem [resolvable:$true] %s347_s23 }
  0x34   : > { %1157 = dma.hbm_to_vmem [thread:$0]  (!%p1664_p6), %s306_s3, 64, %s308_s1, %s295_s26  }
  0x35   : > { %1163 = dma.hbm_to_vmem [thread:$0]  (!%p1664_p6), %s346_s5, 64, %s348_s23, %s315_s28  }
  0x36   : > { %356 = sbr.rel (%p1605_p3) target bundleno = 1143 (0x477), region = 48  ;;  %s1698_s24 = sand.u32 (!%p1605_p3), 1, %s1492_s25  }
  0x37   : > { %s1701_s1 = sshll.u32 (!%p1605_p3), %s1698_s24, 2  ;;  %s359_s9 = scalar_lea.sflag (!%p1605_p3), [#allocation7], %s1698_s24 }
  0x38   : > { %s362_s10 = scalar_lea.vmem (!%p1605_p3), [#allocation6], %s1701_s1 }
  0x3b   : > { %1471 = dma.done.wait (%p1639_p12), %s359_s9, 64  }
  0x3c   : > { %1473 = vsyncadd (%p1639_p12), %s359_s9, 4294967232  ;;  %s368_s5 = sand.u32 1, %s1597_s30   ;;  %s372_s28 = scalar_lea.vmem [#allocation9], %s1701_s1 }
  0x3d   : > { %s369_s6 = scalar_lea.sflag [#allocation10], %s368_s5 }
  0x3e   : > { %1475 = dma.done.wait (%p1639_p12), %s369_s6, 128  }
  0x3f   : > { %1477 = vsyncadd (%p1639_p12), %s369_s6, 4294967168  ;;  %s382_s11 = scalar_lea.vmem [#allocation11], %s1701_s1 }
  0x40   : > { %1479 = dma.done.wait (%p69_p1), [#allocation13], 512  }
  0x41   : > { %1481 = vsyncadd (%p69_p1), [#allocation13], 4294966784  ;;  %vm481_vm0 = vcmask 31744   ;;  %vm460_vm1 = vcmask 261120   ;;  %v1514_v0 = vmov 0.0   ;;  %v1128_v1 = vld [vmem:[#allocation12 + $0x8] sm:$0xff] }
  0x42   : > { %483 = vst.msk [vmem:[#allocation4] sm:$0xff] %vm481_vm0, %v1514_v0  ;;  %v485_v2 = vld [vmem:[%s372_s28] sm:$0xf]  ;;  %470 = vmatpush.bf16.msra.mxu0 %v1128_v1  ;;  %v1127_v3 = vld [vmem:[#allocation12] sm:$0xff]  ;;  %v439_v6 = vld [vmem:[%s362_s10] sm:$0xf] }
  0x43   : > { %484 = vst.msk [vmem:[#allocation5] sm:$0xff] %vm460_vm1, %v1514_v0  ;;  %v570_v4 = vunpack.c.l.b16 %v485_v2  ;;  %s1515_s21 = smov 112   ;;  %s1516_s30 = smov 120   ;;  %vm488_vm2 = vcmask 64512   ;;  %v1248_v10 = vld [vmem:[%s1855_s4] ss:$0 sm:$0xff] }
  0x44   : > { %s1517_s23 = smov 104   ;;  %v493_v7 = vsel %vm488_vm2, %v485_v2, 0  ;;  %vm479_vm3 = vcmask 257024   ;;  %v1518_v36 = vmov -inf   ;;  %v1519_v37 = vmov 0   ;;  %s1523_s17 = smov 8  }
  0x45   : > { %v571_v5 = vpack.c.b16 %v570_v4, %v570_v4  ;;  %502 = vmatpush.bf16.xpose.msra.mxu1 %v493_v7  ;;  %482 = vst.msk [vmem:[#allocation3] sm:$0xff] %vm481_vm0, %v1518_v36  ;;  %1238 = vset.pattern.permute.xlu0 %v1519_v37  ;;  %vm530_vm4 = vcmask 7168   ;;  %v486_v51 = vld [vmem:[%s382_s11] sm:$0xf]  ;;  %vm543_vm5 = vcmask 1043456   ;;  %v1520_v52 = vmov 1  }
  0x46   : > { %471 = vmatpush.bf16.msra.mxu0 %v1127_v3  ;;  %1239 = vset.pattern.permute.xlu1 %v1520_v52  ;;  %v545_v53 = vsel %vm543_vm5, %v486_v51, 0  ;;  %v626_v54 = vunpack.c.l.b16 %v486_v51  ;;  %v1521_v56 = vmov 3   ;;  %vm615_vm6 = vcmask 15368   ;;  %s1524_s15 = smov 16   ;;  %s1525_s16 = smov 24  }
  0x47   : > { %663 = vrot.lane.b32.xlu1 %v571_v5, %s1515_s21  ;;  %572 = vrot.lane.b32.xlu0 %v571_v5, %s1516_s30  ;;  %vm706_vm7 = vcmask 23568   ;;  %vm794_vm8 = vcmask 31768   ;;  %vm654_vm9 = vcmask 130112   ;;  %vm742_vm10 = vcmask 195712   ;;  %s1124_s18 = sshll.u32 %s1500_s27, 3  ;;  %s1096_s19 = sshll.u32 %s1698_s24, 3 }
  0x48   : > { %554 = vmatpush.bf16.msra.mxu2 %v545_v53  ;;  %v627_v55 = vpack.c.b16 %v626_v54, %v626_v54  ;;  %1241 = vset.pattern.permute.xlu2 %v1521_v56  ;;  %vm830_vm11 = vcmask 261312   ;;  %vm846_vm12 = vcmask 60416   ;;  %vm855_vm13 = vcmask 126016   ;;  %s926_s26 = scalar_lea.hbm %s1858_s7, %s1124_s18  ;;  %s1895_s14 = sld [smem:[#allocation31_spill]] }
  0x49   : > { %1105 = vmatmul.msk.bf16.vlgmr.msra.gmra.mxu0 %vm460_vm1, %v439_v6  ;;  %vm864_vm14 = vcmask 191616   ;;  %vm873_vm15 = vcmask 257216   ;;  %s433_s1 = scalar_lea.vmem [#allocation15], %s1096_s19  ;;  %s930_s10 = sshll.u32 %s926_s26, 4  ;;  %s931_s10 = int_to_ptr.hbm [resolvable:$true] %s930_s10 }
  0x4a   : > { %s928_s9 = sshll.u32 %s433_s1, 4  ;;  %s915_s27 = scalar_lea.sflag [#allocation8], %s1698_s24  ;;  %s929_s9 = int_to_ptr.vmem [resolvable:$true] %s928_s9 }
  0x4b   : > { %s1432_s5 = sshra.s32 %s931_s10, 4  ;;  %s1433_s5 = int_to_ptr.hbm [resolvable:$true] %s1432_s5 }
  0x4c   : > { %v1746_v41 = vld [vmem:[#allocation3] sm:$0xff]  ;;  %s1434_s6 = scalar_lea.hbm %s1433_s5, 8  ;;  %p1439_p6 = scmp.lt.s32.totalorder %s1433_s5, %s1858_s7 }
  0x4d   : > { %p1435_p1 = scmp.ne.s32.totalorder %s1433_s5, %s1434_s6 }
  0x4f   : > { %751 = vrot.lane.b32.xlu1 %v571_v5, %s1517_s23  ;;  %v1522_v5 = vmov 2   ;;  %p1436_p3 = pnand %p1435_p1, %p1646_p4 }
  0x51   : > { %p1437_p5 = pneg %p1436_p3 }
  0xb9   : > { %v664_v8 = vpop.permute.xlu1 %663  ;;  %v573_v26 = vpop.permute.xlu0 %572 }
  0xba   : > { %v669_v9 = vsel %vm488_vm2, %v664_v8, 0  ;;  %v578_v27 = vsel %vm488_vm2, %v573_v26, 0 }
  0xbb   : > { %678 = vmatpush.bf16.xpose.msrb.mxu0 %v669_v9  ;;  %587 = vmatpush.bf16.xpose.msra.mxu3 %v578_v27 }
  0xc1   : > { %v752_v28 = vpop.permute.xlu1 %751 }
  0xc2   : > { %v757_v30 = vsel %vm488_vm2, %v752_v28, 0 }
  0xc3   : > { %766 = vmatpush.bf16.xpose.msrb.mxu3 %v757_v30 }
  0xc6   : > { %v473_v11 = vpop.f32.mrf.mxu0 }
  0xc7   : > { %v474_v12 = vadd.f32 %v1248_v10, %v473_v11 }
  0xc9   : > { %v477_v13 = vmul.f32 0.35355338, %v474_v12 }
  0xcb   : > { %v478_v14 = vpack.c.bf16 %v477_v13, %v477_v13 }
  0xcd   : > { %480 = vst.msk [vmem:[#allocation2] sm:$0xf] %vm479_vm3, %v478_v14 }
  0xce   : > { %v475_v15 = vpop.f32.mrf.mxu0 }
  0xd4   : > { %v487_v16 = vld [vmem:[#allocation2] sm:$0xf] }
  0xd5   : > { %v657_v17 = vld [vmem:[#allocation2] sm:$0xf]  ;;  %1106 = vmatmul.msk.bf16.vlgmr.msra.gmra.mxu1 %vm488_vm2, %v487_v16 }
  0xd6   : > { %v563_v18 = vld [vmem:[#allocation2] sm:$0xf]  ;;  %v659_v19 = vunpack.c.l.b16 %v657_v17 }
  0xd7   : > { %v565_v20 = vunpack.c.l.b16 %v563_v18  ;;  %v745_v23 = vld [vmem:[#allocation2] sm:$0xf] }
  0xd8   : > { %v660_v21 = vpack.c.b16 %v659_v19, %v659_v19  ;;  %v747_v24 = vunpack.c.l.b16 %v745_v23  ;;  %v524_v19 = vld [vmem:[#allocation4] sm:$0xff] }
  0xd9   : > { %v566_v22 = vpack.c.b16 %v565_v20, %v565_v20 }
  0xda   : > { %661 = vrot.lane.b32.xlu2 %v660_v21, %s1515_s21  ;;  %v748_v25 = vpack.c.b16 %v747_v24, %v747_v24 }
  0xdb   : > { %567 = vrot.lane.b32.xlu0 %v566_v22, %s1516_s30 }
  0xe2   : > { %749 = vrot.lane.b32.xlu2 %v748_v25, %s1517_s23 }
 0x134   : > { %v662_v29 = vpop.permute.xlu2 %661 }
 0x135   : > { %1110 = vmatmul.msk.bf16.vlgmr.msrb.gmra.mxu0 %vm488_vm2, %v662_v29 }
 0x13c   : > { %v750_v35 = vpop.permute.xlu2 %749 }
 0x14d   : > { %v568_v31 = vpop.permute.xlu0 %567 }
 0x14e   : > { %1108 = vmatmul.msk.bf16.vlgmr.msra.gmra.mxu3 %vm488_vm2, %v568_v31 }
 0x152   : > { %v504_v32 = vpop.f32.mrf.mxu1 }
 0x153   : > { %v509_v33 = vsel %vm488_vm2, %v504_v32, -inf }
 0x154   : > { %510 = vmax.xlane.f32.xlu0 %v509_v33 }
 0x15a   : > { %v506_v34 = vpop.f32.mrf.mxu1 }
 0x15e   : > { %1112 = vmatmul.msk.bf16.vlgmr.msrb.gmra.mxu3 %vm488_vm2, %v750_v35 }
 0x1b2   : > { %v1742_v38 = vpop.f32.mrf.mxu0 }
 0x1b3   : > { %v685_v39 = vsel %vm488_vm2, %v1742_v38, -inf }
 0x1b4   : > { %686 = vmax.xlane.f32.xlu2 %v685_v39 }
 0x1ba   : > { %v682_v40 = vpop.f32.mrf.mxu0 }
 0x1c7   : > { %v511_v42 = vpop.xlane.xlu0 %510 }
 0x1c8   : > { %v512_v43 = vmax.f32 %v1746_v41, %v511_v42 }
 0x1ca   : > { %v513_v44 = vsub.f32 %v1746_v41, %v512_v43  ;;  %562 = vst.msk [vmem:[#allocation3] sm:$0xff] %vm530_vm4, %v512_v43  ;;  %518 = vperm.xlu0 %1238, %v512_v43  }
 0x1cc   : > { %v514_v14 = vmul.f32 1.442695, %v513_v44 }
 0x1d1   : > { %v1751_v45 = vpop.f32.mrf.mxu3  ;;  %v1762_v61 = vld [vmem:[#allocation3] sm:$0xff] }
 0x1d2   : > { %v594_v46 = vsel %vm488_vm2, %v1751_v45, -inf }
 0x1d3   : > { %595 = vmax.xlane.f32.xlu1 %v594_v46 }
 0x1d9   : > { %v591_v47 = vpop.f32.mrf.mxu3 }
 0x1e1   : > { %v768_v48 = vpop.f32.mrf.mxu3 }
 0x1e2   : > { %v773_v49 = vsel %vm488_vm2, %v768_v48, -inf }
 0x1e3   : > { %774 = vmax.xlane.f32.xlu2 %v773_v49 }
 0x1e9   : > { %v770_v50 = vpop.f32.mrf.mxu3 }
 0x1fb   : > { %628 = vrot.lane.b32.xlu2 %v627_v55, %s1516_s30 }
 0x227   : > { %v687_v3 = vpop.xlane.xlu2 %686 }
 0x23c   : > { %v519_v57 = vpop.permute.xlu0 %518 }
 0x23d   : > { %v521_v58 = vsub.f32 %v504_v32, %v519_v57 }
 0x23f   : > { %v522_v59 = vmul.f32 1.442695, %v521_v58 }
 0x241   : > { %1250 = vpow2.f32 %v522_v59 }
 0x242   : > { %1252 = vpow2.f32 %v514_v14 }
 0x246   : > { %v596_v60 = vpop.xlane.xlu1 %595 }
 0x247   : > { %v1765_v62 = vmax.f32 %v1762_v61, %v596_v60  ;;  %v1251_v63 = vpop.eup %1250 }
 0x248   : > { %v526_v1 = vsel %vm488_vm2, %v1251_v63, 0.0  ;;  %v539_v2 = vpack.c.bf16 %v1251_v63, %v1251_v63  ;;  %v1253_v17 = vpop.eup %1252  ;;  %v532_v63 = vld [vmem:[#allocation5] sm:$0xff] }
 0x249   : > { %v598_v0 = vsub.f32 %v1762_v61, %v1765_v62  ;;  %656 = vst.msk [vmem:[#allocation3] sm:$0xff] %vm615_vm6, %v1765_v62  ;;  %603 = vperm.xlu1 %1239, %v1765_v62   ;;  %527 = vadd.xlane.f32.xlu0 %v526_v1  ;;  %v525_v22 = vmul.f32 %v1253_v17, %v524_v19 }
 0x24a   : > { %1107 = vmatmul.msk.bf16.vlgmr.msra.gmra.mxu2 %vm488_vm2, %v539_v2 }
 0x24b   : > { %v599_v44 = vmul.f32 1.442695, %v598_v0 }
 0x250   : > { %v1774_v4 = vld [vmem:[#allocation3] sm:$0xff] }
 0x251   : > { %1240 = vset.pattern.permute.xlu1 %v1522_v5  ;;  %v688_v6 = vmax.f32 %v1774_v4, %v687_v3 }
 0x253   : > { %694 = vperm.xlu1 %1240, %v688_v6   ;;  %v689_v7 = vsub.f32 %v1774_v4, %v688_v6  ;;  %744 = vst.msk [vmem:[#allocation3] sm:$0xff] %vm706_vm7, %v688_v6 }
 0x256   : > { %v775_v8 = vpop.xlane.xlu2 %774 }
 0x25a   : > { %v772_v9 = vld [vmem:[#allocation3] sm:$0xff] }
 0x25b   : > { %v776_v10 = vmax.f32 %v772_v9, %v775_v8  ;;  %716 = vrot.lane.b32.xlu1 %v627_v55, %s1515_s21  ;;  %s1438_s21 = scalar_lea.hbm %s1858_s7, 16 }
 0x25c   : > { %1242 = vset.pattern.permute.xlu1 %v1519_v37  ;;  %p1440_p8 = scmp.lt.s32.totalorder %s1438_s21, %s1434_s6 }
 0x25d   : > { %v777_v11 = vsub.f32 %v772_v9, %v776_v10  ;;  %832 = vst.msk [vmem:[#allocation3] sm:$0xff] %vm794_vm8, %v776_v10  ;;  %782 = vperm.xlu2 %1241, %v776_v10  }
 0x25e   : > { %v629_v12 = vpop.permute.xlu2 %628  ;;  %p1441_p10 = por %p1440_p8, %p1439_p6 }
 0x25f   : > { %v634_v13 = vsel %vm543_vm5, %v629_v12, 0  ;;  %v778_v47 = vmul.f32 1.442695, %v777_v11 }
 0x260   : > { %643 = vmatpush.bf16.msrb.mxu2 %v634_v13  ;;  %p1442_p11 = pnand %p1441_p10, %p1437_p5 }
 0x265   : > { %804 = vrot.lane.b32.xlu2 %v627_v55, %s1517_s23 }
 0x266   : > { %1243 = vset.pattern.permute.xlu2 %v1520_v52 }
 0x2b7   : > { %v783_v15 = vpop.permute.xlu2 %782 }
 0x2b8   : > { %v785_v16 = vsub.f32 %v768_v48, %v783_v15 }
 0x2ba   : > { %v786_v18 = vmul.f32 1.442695, %v785_v16 }
 0x2bb   : > { %v604_v20 = vpop.permute.xlu1 %603 }
 0x2bc   : > { %1254 = vpow2.f32 %v786_v18  ;;  %v606_v21 = vsub.f32 %v1751_v45, %v604_v20  ;;  %v528_v24 = vpop.xlane.xlu0 %527  ;;  %v690_v45 = vmul.f32 1.442695, %v689_v7  ;;  %v1130_v18 = vld [vmem:[#allocation14 + $0x8] sm:$0xff] }
 0x2bd   : > { %v529_v25 = vadd.f32 %v528_v24, %v525_v22  ;;  %906 = vmatpush.bf16.msra.mxu0 %v1130_v18 }
 0x2be   : > { %v607_v23 = vmul.f32 1.442695, %v606_v21  ;;  %v1129_v21 = vld [vmem:[#allocation14] sm:$0xff] }
 0x2bf   : > { %v805_v26 = vpop.permute.xlu2 %804  ;;  %531 = vst.msk [vmem:[#allocation4] sm:$0xff] %vm530_vm4, %v529_v25 }
 0x2c0   : > { %1256 = vpow2.f32 %v607_v23  ;;  %v810_v27 = vsel %vm543_vm5, %v805_v26, 0 }
 0x2c1   : > { %819 = vmatpush.bf16.msra.mxu2 %v810_v27  ;;  %907 = vmatpush.bf16.msra.mxu0 %v1129_v21 }
 0x2c2   : > { %v1255_v28 = vpop.eup %1254 }
 0x2c3   : > { %v790_v29 = vsel %vm488_vm2, %v1255_v28, 0.0 }
 0x2c4   : > { %791 = vadd.xlane.f32.xlu0 %v790_v29 }
 0x2c5   : > { %v695_v30 = vpop.permute.xlu1 %694 }
 0x2c6   : > { %v1257_v31 = vpop.eup %1256  ;;  %v697_v32 = vsub.f32 %v1742_v38, %v695_v30  ;;  %v803_v38 = vpack.c.bf16 %v1255_v28, %v1255_v28  ;;  %v609_v50 = vld [vmem:[#allocation4] sm:$0xff] }
 0x2c7   : > { %v611_v33 = vsel %vm488_vm2, %v1257_v31, 0.0  ;;  %v624_v34 = vpack.c.bf16 %v1257_v31, %v1257_v31 }
 0x2c8   : > { %v698_v35 = vmul.f32 1.442695, %v697_v32  ;;  %612 = vadd.xlane.f32.xlu1 %v611_v33 }
 0x2c9   : > { %1109 = vmatmul.msk.bf16.vlgmr.msrb.gmra.mxu2 %vm488_vm2, %v624_v34 }
 0x2ca   : > { %1258 = vpow2.f32 %v698_v35 }
 0x2cb   : > { %1260 = vpow2.f32 %v599_v44 }
 0x2cc   : > { %1262 = vpow2.f32 %v690_v45 }
 0x2cd   : > { %v717_v36 = vpop.permute.xlu1 %716  ;;  %v556_v39 = vpop.f32.mrf.mxu2  ;;  %1264 = vpow2.f32 %v778_v47 }
 0x2ce   : > { %v722_v37 = vsel %vm543_vm5, %v717_v36, 0 }
 0x2cf   : > { %731 = vmatpush.bf16.msrb.mxu1 %v722_v37 }
 0x2d0   : > { %v1259_v40 = vpop.eup %1258 }
 0x2d1   : > { %v702_v41 = vsel %vm488_vm2, %v1259_v40, 0.0  ;;  %v715_v42 = vpack.c.bf16 %v1259_v40, %v1259_v40  ;;  %v1261_v46 = vpop.eup %1260 }
 0x2d2   : > { %703 = vadd.xlane.f32.xlu2 %v702_v41  ;;  %v1263_v48 = vpop.eup %1262  ;;  %v610_v51 = vmul.f32 %v1261_v46, %v609_v50 }
 0x2d3   : > { %1111 = vmatmul.msk.bf16.vlgmr.msrb.gmra.mxu1 %vm488_vm2, %v715_v42  ;;  %v1265_v49 = vpop.eup %1264  ;;  %v1249_v42 = vld [vmem:[%s1895_s14] ss:$0 sm:$0xff] }
 0x2d5   : > { %v558_v43 = vpop.f32.mrf.mxu2 }
 0x2d9   : > { %1113 = vmatmul.msk.bf16.vlgmr.msra.gmra.mxu2 %vm488_vm2, %v803_v38 }
 0x2e1   : > { %535 = vperm.xlu1 %1242, %v1253_v17  }
 0x2e9   : > { %1244 = vset.pattern.permute.xlu1 %v1522_v5 }
 0x2ea   : > { %620 = vperm.xlu2 %1243, %v1261_v46   ;;  %711 = vperm.xlu1 %1244, %v1263_v48  }
 0x2f2   : > { %1245 = vset.pattern.permute.xlu2 %v1521_v56 }
 0x2f3   : > { %799 = vperm.xlu2 %1245, %v1265_v49  }
 0x2fb   : > { %1246 = vset.pattern.permute.xlu2 %v1520_v52 }
 0x337   : > { %v792_v52 = vpop.xlane.xlu0 %791 }
 0x33b   : > { %v613_v53 = vpop.xlane.xlu1 %612 }
 0x33c   : > { %v614_v54 = vadd.f32 %v613_v53, %v610_v51 }
 0x33e   : > { %616 = vst.msk [vmem:[#allocation4] sm:$0xff] %vm615_vm6, %v614_v54 }
 0x345   : > { %v700_v55 = vld [vmem:[#allocation4] sm:$0xff]  ;;  %v704_v58 = vpop.xlane.xlu2 %703 }
 0x346   : > { %v701_v57 = vmul.f32 %v1263_v48, %v700_v55 }
 0x348   : > { %v705_v59 = vadd.f32 %v704_v58, %v701_v57 }
 0x34a   : > { %707 = vst.msk [vmem:[#allocation4] sm:$0xff] %vm706_vm7, %v705_v59 }
 0x34c   : > { %v645_v60 = vpop.f32.mrf.mxu2 }
 0x34d   : > { %650 = vrot.lane.b32.xlu0 %v645_v60, %s1523_s17  ;;  %v621_v12 = vpop.permute.xlu2 %620 }
 0x350   : > { %v733_v61 = vpop.f32.mrf.mxu1 }
 0x351   : > { %v788_v62 = vld [vmem:[#allocation4] sm:$0xff] }
 0x352   : > { %v789_v0 = vmul.f32 %v1265_v49, %v788_v62 }
 0x353   : > { %v536_v1 = vpop.permute.xlu1 %535 }
 0x354   : > { %v793_v2 = vadd.f32 %v792_v52, %v789_v0  ;;  %v538_v3 = vmul.f32 %v536_v1, %v532_v63  ;;  %v647_v4 = vpop.f32.mrf.mxu2 }
 0x355   : > { %738 = vrot.lane.b32.xlu0 %v733_v61, %s1524_s15 }
 0x356   : > { %795 = vst.msk [vmem:[#allocation4] sm:$0xff] %vm794_vm8, %v793_v2  ;;  %v560_v5 = vadd.f32 %v556_v39, %v538_v3 }
 0x358   : > { %561 = vst.msk [vmem:[#allocation5] sm:$0xff] %vm488_vm2, %v560_v5  ;;  %v735_v6 = vpop.f32.mrf.mxu1 }
 0x35c   : > { %v821_v7 = vpop.f32.mrf.mxu2  ;;  %v712_v16 = vpop.permute.xlu1 %711 }
 0x35d   : > { %826 = vrot.lane.b32.xlu1 %v821_v7, %s1525_s16  ;;  %v836_v8 = vld [vmem:[#allocation4] sm:$0xff] }
 0x35e   : > { %1266 = vrcp.f32 %v836_v8 }
 0x35f   : > { %v617_v11 = vld [vmem:[#allocation5] sm:$0xff] }
 0x360   : > { %v623_v13 = vmul.f32 %v621_v12, %v617_v11 }
 0x364   : > { %v1267_v9 = vpop.eup %1266  ;;  %v823_v10 = vpop.f32.mrf.mxu2 }
 0x365   : > { %859 = vperm.xlu1 %1244, %v1267_v9   ;;  %850 = vperm.xlu2 %1246, %v1267_v9  }
 0x366   : > { %841 = vperm.xlu0 %1238, %v1267_v9  }
 0x36e   : > { %1247 = vset.pattern.permute.xlu0 %v1521_v56  ;;  %v800_v56 = vpop.permute.xlu2 %799 }
 0x36f   : > { %868 = vperm.xlu0 %1247, %v1267_v9  }
 0x3bf   : > { %v651_v14 = vpop.permute.xlu0 %650  ;;  %v851_v28 = vpop.permute.xlu2 %850 }
 0x3c0   : > { %v653_v15 = vadd.f32 %v651_v14, %v623_v13 }
 0x3c2   : > { %655 = vst.msk [vmem:[#allocation5] sm:$0xff] %vm654_vm9, %v653_v15 }
 0x3c7   : > { %v739_v20 = vpop.permute.xlu0 %738 }
 0x3c9   : > { %v708_v17 = vld [vmem:[#allocation5] sm:$0xff] }
 0x3ca   : > { %v714_v19 = vmul.f32 %v712_v16, %v708_v17 }
 0x3cc   : > { %v741_v22 = vadd.f32 %v739_v20, %v714_v19 }
 0x3ce   : > { %743 = vst.msk [vmem:[#allocation5] sm:$0xff] %vm742_vm10, %v741_v22 }
 0x3cf   : > { %v827_v25 = vpop.permute.xlu1 %826 }
 0x3d5   : > { %v796_v23 = vld [vmem:[#allocation5] sm:$0xff] }
 0x3d6   : > { %v802_v24 = vmul.f32 %v800_v56, %v796_v23 }
 0x3d7   : > { %v860_v30 = vpop.permute.xlu1 %859 }
 0x3d8   : > { %v829_v26 = vadd.f32 %v827_v25, %v802_v24  ;;  %v842_v27 = vpop.permute.xlu0 %841 }
 0x3da   : > { %831 = vst.msk [vmem:[#allocation5] sm:$0xff] %vm830_vm11, %v829_v26 }
 0x3e1   : > { %v848_v29 = vld [vmem:[#allocation5] sm:$0xff]  ;;  %v869_v31 = vpop.permute.xlu0 %868 }
 0x3e2   : > { %v853_v32 = vmul.f32 %v851_v28, %v848_v29  ;;  %v862_v33 = vmul.f32 %v860_v30, %v848_v29  ;;  %v844_v34 = vmul.f32 %v848_v29, %v842_v27  ;;  %v871_v35 = vmul.f32 %v869_v31, %v848_v29 }
 0x3e4   : > { %v854_v36 = vpack.c.bf16 %v853_v32, %v853_v32  ;;  %v845_v37 = vpack.c.bf16 %v844_v34, %v844_v34  ;;  %v863_v39 = vpack.c.bf16 %v862_v33, %v862_v33  ;;  %v872_v40 = vpack.c.bf16 %v871_v35, %v871_v35 }
 0x3e6   : > { %847 = vst.msk [vmem:[#allocation2] sm:$0xf] %vm846_vm12, %v845_v37 }
 0x3e7   : > { %856 = vst.msk [vmem:[#allocation2] sm:$0xf] %vm855_vm13, %v854_v36 }
 0x3e8   : > { %865 = vst.msk [vmem:[#allocation2] sm:$0xf] %vm864_vm14, %v863_v39 }
 0x3e9   : > { %874 = vst.msk [vmem:[#allocation2] sm:$0xf] %vm873_vm15, %v872_v40 }
 0x3f0   : > { %v875_v41 = vld [vmem:[#allocation2] sm:$0xf] }
 0x3f1   : > { %1122 = vmatmul.msk.bf16.vlgmr.msra.gmra.mxu0 %vm460_vm1, %v875_v41 }
 0x46e   : > { %v909_v38 = vpop.f32.mrf.mxu0 }
 0x46f   : > { %v910_v43 = vadd.f32 %v1249_v42, %v909_v38 }
 0x471   : > { %913 = vst.msk [vmem:[%s433_s1] sm:$0xff] %vm460_vm1, %v910_v43 }
 0x472   : > { %1445 = shalt.err (!%p1442_p11)
}
 0x473   : > { %1145 = dma.vmem_to_hbm [thread:$0]  (%p1646_p4), %s929_s9, 128, %s931_s10, %s915_s27  }
 0x476   : > { %v911_v44 = vpop.f32.mrf.mxu0 }
 0x477 PF: > { %s1896_s24 = sld [smem:[#allocation20_spill]] }
 0x478   : > { %s1898_s13 = sld [smem:[#allocation23_spill]] }
 0x47d   : > { %s942_s17 = sand.u32 1, %s1896_s24  }
 0x47e   : > { %p1899_p12 = scmp.ge.s32.totalorder %s1898_s13, 2  ;;  %s943_s15 = scalar_lea.sflag [#allocation8], %s942_s17 }
 0x480   : > { %p1165_p13 = pnand %p1899_p12, %p1654_p9 }
 0x482   : > { %p1166_p0 = pneg %p1165_p13 }
 0x484   : > { %1483 = dma.done.wait (%p1166_p0), %s943_s15, 128  }
 0x485   : > { %1485 = vsyncadd (%p1166_p0), %s943_s15, 4294967168  ;;  %s27_s29 = sadd.s32 1, %s1898_s13   ;;  %s1900_s16 = sld [smem:[#allocation21_spill]] }
 0x486   : > { %p24_p2 = scmp.ge.s32.totalorder %s27_s29, 4   ;;  %s1901_s26 = sld [smem:[#allocation26_spill]] }
 0x487   : > { %s1902_s27 = sld [smem:[#allocation22_spill]]  ;;  %s1904_s24 = smov %s1492_s25 }
 0x488   : > { %s1903_s28 = sld [smem:[#allocation24_spill]]  ;;  %26 = sbr.rel (!%p24_p2) target bundleno = 14 (0xe), region = 133 }
 0x48b   : > { %s1905_s25 = smov %s1900_s16 }
 0x48d   :  { %949 = vsyncpa [#allocation7], 1 }
 0x48e   :  { %951 = vsyncpa [#allocation7 + $0x1], 1 }
 0x48f   :  { %952 = vsyncpa [#allocation10], 1 }
 0x490   :  { %954 = vsyncpa [#allocation10 + $0x1], 1 }
 0x491   :  { %955 = vsyncpa [#allocation13], 1 }
 0x492   :  { %956 = vsyncpa [#allocation8], 1 }
 0x493   :  { %958 = vsyncpa [#allocation8 + $0x1], 1 }

// kernel: tpu_custom_call.1
= control target key start
LH: loop header
LB: loop body
LE: loop exit
PB: predicated region body
PF: predicated region fallthrough
CT: control target
= control target key end

     0   :  { %s1851_s0 = inlined_call_operand.hbm [shape: bf16[2,8,32], index: 0, kind: input, shape index: {}]   ;;  %s1852_s1 = inlined_call_operand.hbm [shape: bf16[2,8,32], index: 1, kind: input, shape index: {}]   ;;  %s1853_s2 = inlined_call_operand.hbm [shape: bf16[2,8,32], index: 2, kind: input, shape index: {}]   ;;  %s1854_s3 = inlined_call_operand.hbm [shape: bf16[32,32], index: 3, kind: input, shape index: {}]   ;;  %s1855_s4 = inlined_call_operand.vmem [shape: f32[1,32], index: 4, kind: input, shape index: {}]   ;;  %s1856_s5 = inlined_call_operand.hbm [shape: bf16[32,32], index: 5, kind: input, shape index: {}]   ;;  %s1857_s6 = inlined_call_operand.vmem [shape: f32[1,32], index: 6, kind: input, shape index: {}]   ;;  %s1858_s7 = inlined_call_operand.hbm [shape: f32[2,8,32], index: 7, kind: output, shape index: {}]  }
   0x1   :  { %1870 = sst [smem:[#allocation28_spill]] %s1852_s1 }
   0x2   :  { %1871 = sst [smem:[#allocation29_spill]] %s1854_s3 }
   0x3   :  { %1872 = sst [smem:[#allocation30_spill]] %s1856_s5 }
   0x4   :  { %1873 = sst [smem:[#allocation31_spill]] %s1857_s6 }
   0x5   :  { %12 = vsyncpa [#allocation7], 0 }
   0x6   :  { %14 = vsyncpa [#allocation7 + $0x1], 0 }
   0x7   :  { %15 = vsyncpa [#allocation10], 0 }
   0x8   :  { %17 = vsyncpa [#allocation10 + $0x1], 0 }
   0x9   :  { %18 = vsyncpa [#allocation13], 0 }
   0xa   :  { %19 = vsyncpa [#allocation8], 0 }
   0xb   :  { %21 = vsyncpa [#allocation8 + $0x1], 0  ;;  %s1566_s24 = smov 0   ;;  %s1568_s25 = smov 0  }
   0xc   :  { %s1570_s26 = smov 0   ;;  %s1572_s27 = smov 0  }
   0xd   :  { %s1574_s28 = smov 0   ;;  %s1576_s29 = smov 0  }
   0xe LB: > { %1874 = sst [smem:[#allocation20_spill]] %s1488_s24  ;;  %s1597_s30 = sadd.s32 4294967295, %s1508_s29   ;;  %s1508_s29 = sphi %s1576_s29, %s27_s29   ;;  %s1504_s28 = sphi %s1574_s28, %s1903_s28   ;;  %s1500_s27 = sphi %s1572_s27, %s1902_s27   ;;  %s1496_s26 = sphi %s1570_s26, %s1901_s26   ;;  %s1492_s25 = sphi %s1568_s25, %s1905_s25   ;;  %s1488_s24 = sphi %s1566_s24, %s1904_s24  }
   0xf   : > { %1875 = sst [smem:[#allocation21_spill]] %s1496_s26  ;;  %p1080_p0 = scmp.ge.s32.totalorder %s1508_s29, 1 }
  0x10   : > { %1876 = sst [smem:[#allocation22_spill]] %s1504_s28  ;;  %p69_p1 = scmp.eq.s32.totalorder %s1597_s30, 0 }
  0x11   : > { %1877 = sst [smem:[#allocation23_spill]] %s1508_s29  ;;  %p247_p2 = scmp.lt.s32.totalorder %s1508_s29, 3 }
  0x12   : > { %s1878_s3 = sld [smem:[#allocation29_spill]]  ;;  %s1510_s12 = smov [#allocation12]  }
  0x13   : > { %p1605_p3 = pnand %p1080_p0, %p247_p2  ;;  %s260_s13 = sshll.u32 %s1510_s12, 4  ;;  %s261_s13 = int_to_ptr.vmem [resolvable:$true] %s260_s13 }
  0x14   : > { %s1859_s15 = smov 64   ;;  %s1860_s16 = smov 4  }
  0x15   : > { %p1147_p4 = pneg %p1605_p3  ;;  %s1079_s17 = sadd.s32 4294967294, %s1508_s29  }
  0x16   : > { %s46_s18 = sadd.s32 1, %s1504_s28  ;;  %s55_s19 = sadd.s32 1, %s1496_s26 }
  0x17   : > { %p1613_p5 = pnand %p1147_p4, %p69_p1  ;;  %p48_p7 = scmp.ge.s32.totalorder %s46_s18, 2 }
  0x18   : > { %s258_s10 = sshll.u32 %s1878_s3, 4  ;;  %p62_p8 = scmp.ne.s32.totalorder %s1496_s26, %s1492_s25  ;;  %s259_s10 = int_to_ptr.hbm [resolvable:$true] %s258_s10 }
  0x19   : > { %1150 = dma.hbm_to_vmem [thread:$0]  (!%p1613_p5), %s259_s10, 256, %s261_s13, [#allocation13], %s1859_s15, %s1859_s15, %s1860_s16  }
  0x1a   : > { %p63_p9 = scmp.eq.s32.totalorder %s1508_s29, 0  ;;  %p68_p10 = scmp.ne.s32.totalorder %s1492_s25, %s1488_s24 }
  0x1b   : > { %s1907_s18 = smov (%p48_p7, %s46_s18), 0  ;;  %p234_p13 = scmp.eq.s32.totalorder %s1597_s30, 1 }
  0x1c   : > { %1881 = sst [smem:[#allocation24_spill]] %s1907_s18  ;;  %p1633_p11 = por %p63_p9, %p62_p8 }
  0x1d   : > { %p1639_p12 = por %p69_p1, %p68_p10  ;;  %s50_s22 = ssub.s32 %s1504_s28, %s1907_s18 }
  0x1e   : > { %p53_p0 = scmp.eq.s32.totalorder %s50_s22, 0  ;;  %p240_p2 = scmp.eq.s32.totalorder %s1079_s17, 1 }
  0x1f   : > { %p1646_p4 = por %p234_p13, %p62_p8  ;;  %p1170_p7 = scmp.lt.s32.totalorder %s1508_s29, 2 }
  0x20   : > { %s1652_s8 = scalar_select %p53_p0, %s1496_s26, %s55_s19  }
  0x21   : > { %s1884_s23 = scalar_select %p1646_p4, 1, 0 }
  0x22   : > { %1886 = sst [smem:[#allocation26_spill]] %s1652_s8  ;;  %p1654_p9 = por %p240_p2, %p68_p10 }
  0x23   : > { %1885 = sst [smem:[#allocation25_spill]] %s1884_s23  ;;  %s294_s10 = sand.u32 1, %s1496_s26  }
  0x24   : > { %s1887_s9 = scalar_select %p1654_p9, 1, 0 }
  0x25   : > { %s1659_s12 = sshll.u32 %s294_s10, 2  ;;  %s1085_s13 = sshll.u32 %s1504_s28, 2 }
  0x26   : > { %1888 = sst [smem:[#allocation27_spill]] %s1887_s9  ;;  %p1664_p6 = pnand %p1170_p7, %p1633_p11 }
  0x27   : > { %s314_s22 = sand.u32 1, %s1508_s29   ;;  %s1890_s1 = sld [smem:[#allocation28_spill]] }
  0x28   : > { %s318_s18 = scalar_lea.vmem [#allocation9], %s1659_s12  ;;  %s315_s28 = scalar_lea.sflag [#allocation10], %s314_s22 }
  0x29   : > { %s327_s8 = sshll.u32 %s318_s18, 4  ;;  %s1891_s5 = sld [smem:[#allocation30_spill]]  ;;  %s328_s8 = int_to_ptr.vmem [resolvable:$true] %s327_s8 }
  0x2a   : > { %s1513_s29 = smov [#allocation14]   ;;  %s1892_s15 = smov 4  }
  0x2b   : > { %s277_s24 = sshll.u32 %s1513_s29, 4  ;;  %s303_s22 = scalar_lea.hbm %s1851_s0, %s1085_s13  ;;  %s278_s24 = int_to_ptr.vmem [resolvable:$true] %s277_s24 }
  0x2c   : > { %s295_s26 = scalar_lea.sflag [#allocation7], %s294_s10  ;;  %s343_s14 = scalar_lea.hbm %s1853_s2, %s1085_s13 }
  0x2d   : > { %s323_s16 = scalar_lea.hbm %s1890_s1, %s1085_s13  ;;  %s338_s6 = scalar_lea.vmem [#allocation11], %s1659_s12 }
  0x2e   : > { %s325_s3 = sshll.u32 %s323_s16, 4  ;;  %s1893_s16 = smov 64   ;;  %s326_s3 = int_to_ptr.hbm [resolvable:$true] %s325_s3 }
  0x2f   : > { %1160 = dma.hbm_to_vmem [thread:$0]  (!%p1664_p6), %s326_s3, 64, %s328_s8, %s315_s28  }
  0x30   : > { %s275_s9 = sshll.u32 %s1891_s5, 4  ;;  %s305_s3 = sshll.u32 %s303_s22, 4  ;;  %s276_s9 = int_to_ptr.hbm [resolvable:$true] %s275_s9  ;;  %s306_s3 = int_to_ptr.hbm [resolvable:$true] %s305_s3 }
  0x31   : > { %1153 = dma.hbm_to_vmem [thread:$0]  (!%p1613_p5), %s276_s9, 256, %s278_s24, [#allocation13], %s1893_s16, %s1893_s16, %s1892_s15  }
  0x32   : > { %s298_s8 = scalar_lea.vmem [#allocation6], %s1659_s12  ;;  %s345_s5 = sshll.u32 %s343_s14, 4  ;;  %s346_s5 = int_to_ptr.hbm [resolvable:$true] %s345_s5 }
  0x33   : > { %s307_s1 = sshll.u32 %s298_s8, 4  ;;  %s347_s23 = sshll.u32 %s338_s6, 4  ;;  %s308_s1 = int_to_ptr.vmem [resolvable:$true] %s307_s1  ;;  %s348_s23 = int_to_ptr.vmem [resolvable:$true] %s347_s23 }
  0x34   : > { %1157 = dma.hbm_to_vmem [thread:$0]  (!%p1664_p6), %s306_s3, 64, %s308_s1, %s295_s26  }
  0x35   : > { %1163 = dma.hbm_to_vmem [thread:$0]  (!%p1664_p6), %s346_s5, 64, %s348_s23, %s315_s28  }
  0x36   : > { %356 = sbr.rel (%p1605_p3) target bundleno = 1143 (0x477), region = 48  ;;  %s1698_s24 = sand.u32 (!%p1605_p3), 1, %s1492_s25  }
  0x37   : > { %s1701_s1 = sshll.u32 (!%p1605_p3), %s1698_s24, 2  ;;  %s359_s9 = scalar_lea.sflag (!%p1605_p3), [#allocation7], %s1698_s24 }
  0x38   : > { %s362_s10 = scalar_lea.vmem (!%p1605_p3), [#allocation6], %s1701_s1 }
  0x3b   : > { %1471 = dma.done.wait (%p1639_p12), %s359_s9, 64  }
  0x3c   : > { %1473 = vsyncadd (%p1639_p12), %s359_s9, 4294967232  ;;  %s368_s5 = sand.u32 1, %s1597_s30   ;;  %s372_s28 = scalar_lea.vmem [#allocation9], %s1701_s1 }
  0x3d   : > { %s369_s6 = scalar_lea.sflag [#allocation10], %s368_s5 }
  0x3e   : > { %1475 = dma.done.wait (%p1639_p12), %s369_s6, 128  }
  0x3f   : > { %1477 = vsyncadd (%p1639_p12), %s369_s6, 4294967168  ;;  %s382_s11 = scalar_lea.vmem [#allocation11], %s1701_s1 }
  0x40   : > { %1479 = dma.done.wait (%p69_p1), [#allocation13], 512  }
  0x41   : > { %1481 = vsyncadd (%p69_p1), [#allocation13], 4294966784  ;;  %vm481_vm0 = vcmask 31744   ;;  %vm460_vm1 = vcmask 261120   ;;  %v1514_v0 = vmov 0.0   ;;  %v1128_v1 = vld [vmem:[#allocation12 + $0x8] sm:$0xff] }
  0x42   : > { %483 = vst.msk [vmem:[#allocation4] sm:$0xff] %vm481_vm0, %v1514_v0  ;;  %v485_v2 = vld [vmem:[%s372_s28] sm:$0xf]  ;;  %470 = vmatpush.bf16.msra.mxu0 %v1128_v1  ;;  %v1127_v3 = vld [vmem:[#allocation12] sm:$0xff]  ;;  %v439_v6 = vld [vmem:[%s362_s10] sm:$0xf] }
  0x43   : > { %484 = vst.msk [vmem:[#allocation5] sm:$0xff] %vm460_vm1, %v1514_v0  ;;  %v570_v4 = vunpack.c.l.b16 %v485_v2  ;;  %s1515_s21 = smov 112   ;;  %s1516_s30 = smov 120   ;;  %vm488_vm2 = vcmask 64512   ;;  %v1248_v10 = vld [vmem:[%s1855_s4] ss:$0 sm:$0xff] }
  0x44   : > { %s1517_s23 = smov 104   ;;  %v493_v7 = vsel %vm488_vm2, %v485_v2, 0  ;;  %vm479_vm3 = vcmask 257024   ;;  %v1518_v36 = vmov -inf   ;;  %v1519_v37 = vmov 0   ;;  %s1523_s17 = smov 8  }
  0x45   : > { %v571_v5 = vpack.c.b16 %v570_v4, %v570_v4  ;;  %502 = vmatpush.bf16.xpose.msra.mxu1 %v493_v7  ;;  %482 = vst.msk [vmem:[#allocation3] sm:$0xff] %vm481_vm0, %v1518_v36  ;;  %1238 = vset.pattern.permute.xlu0 %v1519_v37  ;;  %vm530_vm4 = vcmask 7168   ;;  %v486_v51 = vld [vmem:[%s382_s11] sm:$0xf]  ;;  %vm543_vm5 = vcmask 1043456   ;;  %v1520_v52 = vmov 1  }
  0x46   : > { %471 = vmatpush.bf16.msra.mxu0 %v1127_v3  ;;  %1239 = vset.pattern.permute.xlu1 %v1520_v52  ;;  %v545_v53 = vsel %vm543_vm5, %v486_v51, 0  ;;  %v626_v54 = vunpack.c.l.b16 %v486_v51  ;;  %v1521_v56 = vmov 3   ;;  %vm615_vm6 = vcmask 15368   ;;  %s1524_s15 = smov 16   ;;  %s1525_s16 = smov 24  }
  0x47   : > { %663 = vrot.lane.b32.xlu1 %v571_v5, %s1515_s21  ;;  %572 = vrot.lane.b32.xlu0 %v571_v5, %s1516_s30  ;;  %vm706_vm7 = vcmask 23568   ;;  %vm794_vm8 = vcmask 31768   ;;  %vm654_vm9 = vcmask 130112   ;;  %vm742_vm10 = vcmask 195712   ;;  %s1124_s18 = sshll.u32 %s1500_s27, 3  ;;  %s1096_s19 = sshll.u32 %s1698_s24, 3 }
  0x48   : > { %554 = vmatpush.bf16.msra.mxu2 %v545_v53  ;;  %v627_v55 = vpack.c.b16 %v626_v54, %v626_v54  ;;  %1241 = vset.pattern.permute.xlu2 %v1521_v56  ;;  %vm830_vm11 = vcmask 261312   ;;  %vm846_vm12 = vcmask 60416   ;;  %vm855_vm13 = vcmask 126016   ;;  %s926_s26 = scalar_lea.hbm %s1858_s7, %s1124_s18  ;;  %s1895_s14 = sld [smem:[#allocation31_spill]] }
  0x49   : > { %1105 = vmatmul.msk.bf16.vlgmr.msra.gmra.mxu0 %vm460_vm1, %v439_v6  ;;  %vm864_vm14 = vcmask 191616   ;;  %vm873_vm15 = vcmask 257216   ;;  %s433_s1 = scalar_lea.vmem [#allocation15], %s1096_s19  ;;  %s930_s10 = sshll.u32 %s926_s26, 4  ;;  %s931_s10 = int_to_ptr.hbm [resolvable:$true] %s930_s10 }
  0x4a   : > { %s928_s9 = sshll.u32 %s433_s1, 4  ;;  %s915_s27 = scalar_lea.sflag [#allocation8], %s1698_s24  ;;  %s929_s9 = int_to_ptr.vmem [resolvable:$true] %s928_s9 }
  0x4b   : > { %s1432_s5 = sshra.s32 %s931_s10, 4  ;;  %s1433_s5 = int_to_ptr.hbm [resolvable:$true] %s1432_s5 }
  0x4c   : > { %v1746_v41 = vld [vmem:[#allocation3] sm:$0xff]  ;;  %s1434_s6 = scalar_lea.hbm %s1433_s5, 8  ;;  %p1439_p6 = scmp.lt.s32.totalorder %s1433_s5, %s1858_s7 }
  0x4d   : > { %p1435_p1 = scmp.ne.s32.totalorder %s1433_s5, %s1434_s6 }
  0x4f   : > { %751 = vrot.lane.b32.xlu1 %v571_v5, %s1517_s23  ;;  %v1522_v5 = vmov 2   ;;  %p1436_p3 = pnand %p1435_p1, %p1646_p4 }
  0x51   : > { %p1437_p5 = pneg %p1436_p3 }
  0xb9   : > { %v664_v8 = vpop.permute.xlu1 %663  ;;  %v573_v26 = vpop.permute.xlu0 %572 }
  0xba   : > { %v669_v9 = vsel %vm488_vm2, %v664_v8, 0  ;;  %v578_v27 = vsel %vm488_vm2, %v573_v26, 0 }
  0xbb   : > { %678 = vmatpush.bf16.xpose.msrb.mxu0 %v669_v9  ;;  %587 = vmatpush.bf16.xpose.msra.mxu3 %v578_v27 }
  0xc1   : > { %v752_v28 = vpop.permute.xlu1 %751 }
  0xc2   : > { %v757_v30 = vsel %vm488_vm2, %v752_v28, 0 }
  0xc3   : > { %766 = vmatpush.bf16.xpose.msrb.mxu3 %v757_v30 }
  0xc6   : > { %v473_v11 = vpop.f32.mrf.mxu0 }
  0xc7   : > { %v474_v12 = vadd.f32 %v1248_v10, %v473_v11 }
  0xc9   : > { %v477_v13 = vmul.f32 0.35355338, %v474_v12 }
  0xcb   : > { %v478_v14 = vpack.c.bf16 %v477_v13, %v477_v13 }
  0xcd   : > { %480 = vst.msk [vmem:[#allocation2] sm:$0xf] %vm479_vm3, %v478_v14 }
  0xce   : > { %v475_v15 = vpop.f32.mrf.mxu0 }
  0xd4   : > { %v487_v16 = vld [vmem:[#allocation2] sm:$0xf] }
  0xd5   : > { %v657_v17 = vld [vmem:[#allocation2] sm:$0xf]  ;;  %1106 = vmatmul.msk.bf16.vlgmr.msra.gmra.mxu1 %vm488_vm2, %v487_v16 }
  0xd6   : > { %v563_v18 = vld [vmem:[#allocation2] sm:$0xf]  ;;  %v659_v19 = vunpack.c.l.b16 %v657_v17 }
  0xd7   : > { %v565_v20 = vunpack.c.l.b16 %v563_v18  ;;  %v745_v23 = vld [vmem:[#allocation2] sm:$0xf] }
  0xd8   : > { %v660_v21 = vpack.c.b16 %v659_v19, %v659_v19  ;;  %v747_v24 = vunpack.c.l.b16 %v745_v23  ;;  %v524_v19 = vld [vmem:[#allocation4] sm:$0xff] }
  0xd9   : > { %v566_v22 = vpack.c.b16 %v565_v20, %v565_v20 }
  0xda   : > { %661 = vrot.lane.b32.xlu2 %v660_v21, %s1515_s21  ;;  %v748_v25 = vpack.c.b16 %v747_v24, %v747_v24 }
  0xdb   : > { %567 = vrot.lane.b32.xlu0 %v566_v22, %s1516_s30 }
  0xe2   : > { %749 = vrot.lane.b32.xlu2 %v748_v25, %s1517_s23 }
 0x134   : > { %v662_v29 = vpop.permute.xlu2 %661 }
 0x135   : > { %1110 = vmatmul.msk.bf16.vlgmr.msrb.gmra.mxu0 %vm488_vm2, %v662_v29 }
 0x13c   : > { %v750_v35 = vpop.permute.xlu2 %749 }
 0x14d   : > { %v568_v31 = vpop.permute.xlu0 %567 }
 0x14e   : > { %1108 = vmatmul.msk.bf16.vlgmr.msra.gmra.mxu3 %vm488_vm2, %v568_v31 }
 0x152   : > { %v504_v32 = vpop.f32.mrf.mxu1 }
 0x153   : > { %v509_v33 = vsel %vm488_vm2, %v504_v32, -inf }
 0x154   : > { %510 = vmax.xlane.f32.xlu0 %v509_v33 }
 0x15a   : > { %v506_v34 = vpop.f32.mrf.mxu1 }
 0x15e   : > { %1112 = vmatmul.msk.bf16.vlgmr.msrb.gmra.mxu3 %vm488_vm2, %v750_v35 }
 0x1b2   : > { %v1742_v38 = vpop.f32.mrf.mxu0 }
 0x1b3   : > { %v685_v39 = vsel %vm488_vm2, %v1742_v38, -inf }
 0x1b4   : > { %686 = vmax.xlane.f32.xlu2 %v685_v39 }
 0x1ba   : > { %v682_v40 = vpop.f32.mrf.mxu0 }
 0x1c7   : > { %v511_v42 = vpop.xlane.xlu0 %510 }
 0x1c8   : > { %v512_v43 = vmax.f32 %v1746_v41, %v511_v42 }
 0x1ca   : > { %v513_v44 = vsub.f32 %v1746_v41, %v512_v43  ;;  %562 = vst.msk [vmem:[#allocation3] sm:$0xff] %vm530_vm4, %v512_v43  ;;  %518 = vperm.xlu0 %1238, %v512_v43  }
 0x1cc   : > { %v514_v14 = vmul.f32 1.442695, %v513_v44 }
 0x1d1   : > { %v1751_v45 = vpop.f32.mrf.mxu3  ;;  %v1762_v61 = vld [vmem:[#allocation3] sm:$0xff] }
 0x1d2   : > { %v594_v46 = vsel %vm488_vm2, %v1751_v45, -inf }
 0x1d3   : > { %595 = vmax.xlane.f32.xlu1 %v594_v46 }
 0x1d9   : > { %v591_v47 = vpop.f32.mrf.mxu3 }
 0x1e1   : > { %v768_v48 = vpop.f32.mrf.mxu3 }
 0x1e2   : > { %v773_v49 = vsel %vm488_vm2, %v768_v48, -inf }
 0x1e3   : > { %774 = vmax.xlane.f32.xlu2 %v773_v49 }
 0x1e9   : > { %v770_v50 = vpop.f32.mrf.mxu3 }
 0x1fb   : > { %628 = vrot.lane.b32.xlu2 %v627_v55, %s1516_s30 }
 0x227   : > { %v687_v3 = vpop.xlane.xlu2 %686 }
 0x23c   : > { %v519_v57 = vpop.permute.xlu0 %518 }
 0x23d   : > { %v521_v58 = vsub.f32 %v504_v32, %v519_v57 }
 0x23f   : > { %v522_v59 = vmul.f32 1.442695, %v521_v58 }
 0x241   : > { %1250 = vpow2.f32 %v522_v59 }
 0x242   : > { %1252 = vpow2.f32 %v514_v14 }
 0x246   : > { %v596_v60 = vpop.xlane.xlu1 %595 }
 0x247   : > { %v1765_v62 = vmax.f32 %v1762_v61, %v596_v60  ;;  %v1251_v63 = vpop.eup %1250 }
 0x248   : > { %v526_v1 = vsel %vm488_vm2, %v1251_v63, 0.0  ;;  %v539_v2 = vpack.c.bf16 %v1251_v63, %v1251_v63  ;;  %v1253_v17 = vpop.eup %1252  ;;  %v532_v63 = vld [vmem:[#allocation5] sm:$0xff] }
 0x249   : > { %v598_v0 = vsub.f32 %v1762_v61, %v1765_v62  ;;  %656 = vst.msk [vmem:[#allocation3] sm:$0xff] %vm615_vm6, %v1765_v62  ;;  %603 = vperm.xlu1 %1239, %v1765_v62   ;;  %527 = vadd.xlane.f32.xlu0 %v526_v1  ;;  %v525_v22 = vmul.f32 %v1253_v17, %v524_v19 }
 0x24a   : > { %1107 = vmatmul.msk.bf16.vlgmr.msra.gmra.mxu2 %vm488_vm2, %v539_v2 }
 0x24b   : > { %v599_v44 = vmul.f32 1.442695, %v598_v0 }
 0x250   : > { %v1774_v4 = vld [vmem:[#allocation3] sm:$0xff] }
 0x251   : > { %1240 = vset.pattern.permute.xlu1 %v1522_v5  ;;  %v688_v6 = vmax.f32 %v1774_v4, %v687_v3 }
 0x253   : > { %694 = vperm.xlu1 %1240, %v688_v6   ;;  %v689_v7 = vsub.f32 %v1774_v4, %v688_v6  ;;  %744 = vst.msk [vmem:[#allocation3] sm:$0xff] %vm706_vm7, %v688_v6 }
 0x256   : > { %v775_v8 = vpop.xlane.xlu2 %774 }
 0x25a   : > { %v772_v9 = vld [vmem:[#allocation3] sm:$0xff] }
 0x25b   : > { %v776_v10 = vmax.f32 %v772_v9, %v775_v8  ;;  %716 = vrot.lane.b32.xlu1 %v627_v55, %s1515_s21  ;;  %s1438_s21 = scalar_lea.hbm %s1858_s7, 16 }
 0x25c   : > { %1242 = vset.pattern.permute.xlu1 %v1519_v37  ;;  %p1440_p8 = scmp.lt.s32.totalorder %s1438_s21, %s1434_s6 }
 0x25d   : > { %v777_v11 = vsub.f32 %v772_v9, %v776_v10  ;;  %832 = vst.msk [vmem:[#allocation3] sm:$0xff] %vm794_vm8, %v776_v10  ;;  %782 = vperm.xlu2 %1241, %v776_v10  }
 0x25e   : > { %v629_v12 = vpop.permute.xlu2 %628  ;;  %p1441_p10 = por %p1440_p8, %p1439_p6 }
 0x25f   : > { %v634_v13 = vsel %vm543_vm5, %v629_v12, 0  ;;  %v778_v47 = vmul.f32 1.442695, %v777_v11 }
 0x260   : > { %643 = vmatpush.bf16.msrb.mxu2 %v634_v13  ;;  %p1442_p11 = pnand %p1441_p10, %p1437_p5 }
 0x265   : > { %804 = vrot.lane.b32.xlu2 %v627_v55, %s1517_s23 }
 0x266   : > { %1243 = vset.pattern.permute.xlu2 %v1520_v52 }
 0x2b7   : > { %v783_v15 = vpop.permute.xlu2 %782 }
 0x2b8   : > { %v785_v16 = vsub.f32 %v768_v48, %v783_v15 }
 0x2ba   : > { %v786_v18 = vmul.f32 1.442695, %v785_v16 }
 0x2bb   : > { %v604_v20 = vpop.permute.xlu1 %603 }
 0x2bc   : > { %1254 = vpow2.f32 %v786_v18  ;;  %v606_v21 = vsub.f32 %v1751_v45, %v604_v20  ;;  %v528_v24 = vpop.xlane.xlu0 %527  ;;  %v690_v45 = vmul.f32 1.442695, %v689_v7  ;;  %v1130_v18 = vld [vmem:[#allocation14 + $0x8] sm:$0xff] }
 0x2bd   : > { %v529_v25 = vadd.f32 %v528_v24, %v525_v22  ;;  %906 = vmatpush.bf16.msra.mxu0 %v1130_v18 }
 0x2be   : > { %v607_v23 = vmul.f32 1.442695, %v606_v21  ;;  %v1129_v21 = vld [vmem:[#allocation14] sm:$0xff] }
 0x2bf   : > { %v805_v26 = vpop.permute.xlu2 %804  ;;  %531 = vst.msk [vmem:[#allocation4] sm:$0xff] %vm530_vm4, %v529_v25 }
 0x2c0   : > { %1256 = vpow2.f32 %v607_v23  ;;  %v810_v27 = vsel %vm543_vm5, %v805_v26, 0 }
 0x2c1   : > { %819 = vmatpush.bf16.msra.mxu2 %v810_v27  ;;  %907 = vmatpush.bf16.msra.mxu0 %v1129_v21 }
 0x2c2   : > { %v1255_v28 = vpop.eup %1254 }
 0x2c3   : > { %v790_v29 = vsel %vm488_vm2, %v1255_v28, 0.0 }
 0x2c4   : > { %791 = vadd.xlane.f32.xlu0 %v790_v29 }
 0x2c5   : > { %v695_v30 = vpop.permute.xlu1 %694 }
 0x2c6   : > { %v1257_v31 = vpop.eup %1256  ;;  %v697_v32 = vsub.f32 %v1742_v38, %v695_v30  ;;  %v803_v38 = vpack.c.bf16 %v1255_v28, %v1255_v28  ;;  %v609_v50 = vld [vmem:[#allocation4] sm:$0xff] }
 0x2c7   : > { %v611_v33 = vsel %vm488_vm2, %v1257_v31, 0.0  ;;  %v624_v34 = vpack.c.bf16 %v1257_v31, %v1257_v31 }
 0x2c8   : > { %v698_v35 = vmul.f32 1.442695, %v697_v32  ;;  %612 = vadd.xlane.f32.xlu1 %v611_v33 }
 0x2c9   : > { %1109 = vmatmul.msk.bf16.vlgmr.msrb.gmra.mxu2 %vm488_vm2, %v624_v34 }
 0x2ca   : > { %1258 = vpow2.f32 %v698_v35 }
 0x2cb   : > { %1260 = vpow2.f32 %v599_v44 }
 0x2cc   : > { %1262 = vpow2.f32 %v690_v45 }
 0x2cd   : > { %v717_v36 = vpop.permute.xlu1 %716  ;;  %v556_v39 = vpop.f32.mrf.mxu2  ;;  %1264 = vpow2.f32 %v778_v47 }
 0x2ce   : > { %v722_v37 = vsel %vm543_vm5, %v717_v36, 0 }
 0x2cf   : > { %731 = vmatpush.bf16.msrb.mxu1 %v722_v37 }
 0x2d0   : > { %v1259_v40 = vpop.eup %1258 }
 0x2d1   : > { %v702_v41 = vsel %vm488_vm2, %v1259_v40, 0.0  ;;  %v715_v42 = vpack.c.bf16 %v1259_v40, %v1259_v40  ;;  %v1261_v46 = vpop.eup %1260 }
 0x2d2   : > { %703 = vadd.xlane.f32.xlu2 %v702_v41  ;;  %v1263_v48 = vpop.eup %1262  ;;  %v610_v51 = vmul.f32 %v1261_v46, %v609_v50 }
 0x2d3   : > { %1111 = vmatmul.msk.bf16.vlgmr.msrb.gmra.mxu1 %vm488_vm2, %v715_v42  ;;  %v1265_v49 = vpop.eup %1264  ;;  %v1249_v42 = vld [vmem:[%s1895_s14] ss:$0 sm:$0xff] }
 0x2d5   : > { %v558_v43 = vpop.f32.mrf.mxu2 }
 0x2d9   : > { %1113 = vmatmul.msk.bf16.vlgmr.msra.gmra.mxu2 %vm488_vm2, %v803_v38 }
 0x2e1   : > { %535 = vperm.xlu1 %1242, %v1253_v17  }
 0x2e9   : > { %1244 = vset.pattern.permute.xlu1 %v1522_v5 }
 0x2ea   : > { %620 = vperm.xlu2 %1243, %v1261_v46   ;;  %711 = vperm.xlu1 %1244, %v1263_v48  }
 0x2f2   : > { %1245 = vset.pattern.permute.xlu2 %v1521_v56 }
 0x2f3   : > { %799 = vperm.xlu2 %1245, %v1265_v49  }
 0x2fb   : > { %1246 = vset.pattern.permute.xlu2 %v1520_v52 }
 0x337   : > { %v792_v52 = vpop.xlane.xlu0 %791 }
 0x33b   : > { %v613_v53 = vpop.xlane.xlu1 %612 }
 0x33c   : > { %v614_v54 = vadd.f32 %v613_v53, %v610_v51 }
 0x33e   : > { %616 = vst.msk [vmem:[#allocation4] sm:$0xff] %vm615_vm6, %v614_v54 }
 0x345   : > { %v700_v55 = vld [vmem:[#allocation4] sm:$0xff]  ;;  %v704_v58 = vpop.xlane.xlu2 %703 }
 0x346   : > { %v701_v57 = vmul.f32 %v1263_v48, %v700_v55 }
 0x348   : > { %v705_v59 = vadd.f32 %v704_v58, %v701_v57 }
 0x34a   : > { %707 = vst.msk [vmem:[#allocation4] sm:$0xff] %vm706_vm7, %v705_v59 }
 0x34c   : > { %v645_v60 = vpop.f32.mrf.mxu2 }
 0x34d   : > { %650 = vrot.lane.b32.xlu0 %v645_v60, %s1523_s17  ;;  %v621_v12 = vpop.permute.xlu2 %620 }
 0x350   : > { %v733_v61 = vpop.f32.mrf.mxu1 }
 0x351   : > { %v788_v62 = vld [vmem:[#allocation4] sm:$0xff] }
 0x352   : > { %v789_v0 = vmul.f32 %v1265_v49, %v788_v62 }
 0x353   : > { %v536_v1 = vpop.permute.xlu1 %535 }
 0x354   : > { %v793_v2 = vadd.f32 %v792_v52, %v789_v0  ;;  %v538_v3 = vmul.f32 %v536_v1, %v532_v63  ;;  %v647_v4 = vpop.f32.mrf.mxu2 }
 0x355   : > { %738 = vrot.lane.b32.xlu0 %v733_v61, %s1524_s15 }
 0x356   : > { %795 = vst.msk [vmem:[#allocation4] sm:$0xff] %vm794_vm8, %v793_v2  ;;  %v560_v5 = vadd.f32 %v556_v39, %v538_v3 }
 0x358   : > { %561 = vst.msk [vmem:[#allocation5] sm:$0xff] %vm488_vm2, %v560_v5  ;;  %v735_v6 = vpop.f32.mrf.mxu1 }
 0x35c   : > { %v821_v7 = vpop.f32.mrf.mxu2  ;;  %v712_v16 = vpop.permute.xlu1 %711 }
 0x35d   : > { %826 = vrot.lane.b32.xlu1 %v821_v7, %s1525_s16  ;;  %v836_v8 = vld [vmem:[#allocation4] sm:$0xff] }
 0x35e   : > { %1266 = vrcp.f32 %v836_v8 }
 0x35f   : > { %v617_v11 = vld [vmem:[#allocation5] sm:$0xff] }
 0x360   : > { %v623_v13 = vmul.f32 %v621_v12, %v617_v11 }
 0x364   : > { %v1267_v9 = vpop.eup %1266  ;;  %v823_v10 = vpop.f32.mrf.mxu2 }
 0x365   : > { %859 = vperm.xlu1 %1244, %v1267_v9   ;;  %850 = vperm.xlu2 %1246, %v1267_v9  }
 0x366   : > { %841 = vperm.xlu0 %1238, %v1267_v9  }
 0x36e   : > { %1247 = vset.pattern.permute.xlu0 %v1521_v56  ;;  %v800_v56 = vpop.permute.xlu2 %799 }
 0x36f   : > { %868 = vperm.xlu0 %1247, %v1267_v9  }
 0x3bf   : > { %v651_v14 = vpop.permute.xlu0 %650  ;;  %v851_v28 = vpop.permute.xlu2 %850 }
 0x3c0   : > { %v653_v15 = vadd.f32 %v651_v14, %v623_v13 }
 0x3c2   : > { %655 = vst.msk [vmem:[#allocation5] sm:$0xff] %vm654_vm9, %v653_v15 }
 0x3c7   : > { %v739_v20 = vpop.permute.xlu0 %738 }
 0x3c9   : > { %v708_v17 = vld [vmem:[#allocation5] sm:$0xff] }
 0x3ca   : > { %v714_v19 = vmul.f32 %v712_v16, %v708_v17 }
 0x3cc   : > { %v741_v22 = vadd.f32 %v739_v20, %v714_v19 }
 0x3ce   : > { %743 = vst.msk [vmem:[#allocation5] sm:$0xff] %vm742_vm10, %v741_v22 }
 0x3cf   : > { %v827_v25 = vpop.permute.xlu1 %826 }
 0x3d5   : > { %v796_v23 = vld [vmem:[#allocation5] sm:$0xff] }
 0x3d6   : > { %v802_v24 = vmul.f32 %v800_v56, %v796_v23 }
 0x3d7   : > { %v860_v30 = vpop.permute.xlu1 %859 }
 0x3d8   : > { %v829_v26 = vadd.f32 %v827_v25, %v802_v24  ;;  %v842_v27 = vpop.permute.xlu0 %841 }
 0x3da   : > { %831 = vst.msk [vmem:[#allocation5] sm:$0xff] %vm830_vm11, %v829_v26 }
 0x3e1   : > { %v848_v29 = vld [vmem:[#allocation5] sm:$0xff]  ;;  %v869_v31 = vpop.permute.xlu0 %868 }
 0x3e2   : > { %v853_v32 = vmul.f32 %v851_v28, %v848_v29  ;;  %v862_v33 = vmul.f32 %v860_v30, %v848_v29  ;;  %v844_v34 = vmul.f32 %v848_v29, %v842_v27  ;;  %v871_v35 = vmul.f32 %v869_v31, %v848_v29 }
 0x3e4   : > { %v854_v36 = vpack.c.bf16 %v853_v32, %v853_v32  ;;  %v845_v37 = vpack.c.bf16 %v844_v34, %v844_v34  ;;  %v863_v39 = vpack.c.bf16 %v862_v33, %v862_v33  ;;  %v872_v40 = vpack.c.bf16 %v871_v35, %v871_v35 }
 0x3e6   : > { %847 = vst.msk [vmem:[#allocation2] sm:$0xf] %vm846_vm12, %v845_v37 }
 0x3e7   : > { %856 = vst.msk [vmem:[#allocation2] sm:$0xf] %vm855_vm13, %v854_v36 }
 0x3e8   : > { %865 = vst.msk [vmem:[#allocation2] sm:$0xf] %vm864_vm14, %v863_v39 }
 0x3e9   : > { %874 = vst.msk [vmem:[#allocation2] sm:$0xf] %vm873_vm15, %v872_v40 }
 0x3f0   : > { %v875_v41 = vld [vmem:[#allocation2] sm:$0xf] }
 0x3f1   : > { %1122 = vmatmul.msk.bf16.vlgmr.msra.gmra.mxu0 %vm460_vm1, %v875_v41 }
 0x46e   : > { %v909_v38 = vpop.f32.mrf.mxu0 }
 0x46f   : > { %v910_v43 = vadd.f32 %v1249_v42, %v909_v38 }
 0x471   : > { %913 = vst.msk [vmem:[%s433_s1] sm:$0xff] %vm460_vm1, %v910_v43 }
 0x472   : > { %1445 = shalt.err (!%p1442_p11)
}
 0x473   : > { %1145 = dma.vmem_to_hbm [thread:$0]  (%p1646_p4), %s929_s9, 128, %s931_s10, %s915_s27  }
 0x476   : > { %v911_v44 = vpop.f32.mrf.mxu0 }
 0x477 PF: > { %s1896_s24 = sld [smem:[#allocation20_spill]] }
 0x478   : > { %s1898_s13 = sld [smem:[#allocation23_spill]] }
 0x47d   : > { %s942_s17 = sand.u32 1, %s1896_s24  }
 0x47e   : > { %p1899_p12 = scmp.ge.s32.totalorder %s1898_s13, 2  ;;  %s943_s15 = scalar_lea.sflag [#allocation8], %s942_s17 }
 0x480   : > { %p1165_p13 = pnand %p1899_p12, %p1654_p9 }
 0x482   : > { %p1166_p0 = pneg %p1165_p13 }
 0x484   : > { %1483 = dma.done.wait (%p1166_p0), %s943_s15, 128  }
 0x485   : > { %1485 = vsyncadd (%p1166_p0), %s943_s15, 4294967168  ;;  %s27_s29 = sadd.s32 1, %s1898_s13   ;;  %s1900_s16 = sld [smem:[#allocation21_spill]] }
 0x486   : > { %p24_p2 = scmp.ge.s32.totalorder %s27_s29, 4   ;;  %s1901_s26 = sld [smem:[#allocation26_spill]] }
 0x487   : > { %s1902_s27 = sld [smem:[#allocation22_spill]]  ;;  %s1904_s24 = smov %s1492_s25 }
 0x488   : > { %s1903_s28 = sld [smem:[#allocation24_spill]]  ;;  %26 = sbr.rel (!%p24_p2) target bundleno = 14 (0xe), region = 133 }
 0x48b   : > { %s1905_s25 = smov %s1900_s16 }
 0x48d   :  { %949 = vsyncpa [#allocation7], 1 }
 0x48e   :  { %951 = vsyncpa [#allocation7 + $0x1], 1 }
 0x48f   :  { %952 = vsyncpa [#allocation10], 1 }
 0x490   :  { %954 = vsyncpa [#allocation10 + $0x1], 1 }
 0x491   :  { %955 = vsyncpa [#allocation13], 1 }
 0x492   :  { %956 = vsyncpa [#allocation8], 1 }
 0x493   :  { %958 = vsyncpa [#allocation8 + $0x1], 1 }

</bundles_post_ra>
